<compile_context>
chip_gen: v6e
topology: v6e:2x2x1
jax: 0.10.0
libtpu: 0.0.40
codegen_flags: <defaults>
</compile_context>

<pallas_src>
import math
import jax
import jax.numpy as jnp
from jax.experimental import pallas as pl
from jax.experimental.pallas import tpu as pltpu

# ----------------------------- config (small) ------------------------------
B = 2
C_IN = 32            # stands for 2048
C_MID = 16           # stands for 512
H = 8
W = 8
HW = H * W
JOINT_NUM = 8        # stands for mano.sh_joint_num = 21
ORIG_JOINT_NUM = 5   # stands for mano.orig_joint_num = 16
N_ROT = ORIG_JOINT_NUM           # rotations per sample (root + hand)
SHAPE_DIM = 10       # mano.shape_param_dim
FEAT_DIM = JOINT_NUM * (C_MID + 3)
POSE6_DIM = (ORIG_JOINT_NUM - 1) * 6

HEAD_DIM = SHAPE_DIM + 3          # fused shape + cam head width (13)
POSE_OUT = 6 + POSE6_DIM          # fused root + hand pose head width (30)
SLAB_USED = HEAD_DIM + 3 * N_ROT  # 13 + 15 = 28 useful columns in the output slab
SLAB = 128                        # lane-dense output slab width

# cfg.* stand-ins for get_root_trans
FOCAL = (1500.0, 1500.0)
CAMERA_3D_SIZE = 0.3
INPUT_HAND_SHAPE = (256, 256)
K_VALUE = math.sqrt(FOCAL[0] * FOCAL[1] * CAMERA_3D_SIZE * CAMERA_3D_SIZE
                    / (INPUT_HAND_SHAPE[0] * INPUT_HAND_SHAPE[1]))

VMEM_SPEC = pl.BlockSpec(memory_space=pltpu.MemorySpace.VMEM)


# ------------------------------- kernel -------------------------------------
def _fused_forward_kernel(x_ref, convw_ref, convb_ref, headw_ref, headb_ref,
                          bil_ref, jimgf_ref, wps_ref, wpj_ref, poseb_ref, o_ref):
    # x_ref: (B, HW, C_IN) bf16 -- NHWC view of the backbone feature map.
    x = x_ref[...]
    bsz = x.shape[0]

    # ---- global average pool + fused shape/cam heads (one f32 matmul) ----
    pooled = jnp.mean(x.astype(jnp.float32), axis=1)                        # (B, C_IN)
    heads = jnp.dot(pooled, headw_ref[...],
                    preferred_element_type=jnp.float32) + headb_ref[...]    # (B, 13)

    # root translation: [cam_xy, k * sigmoid(cam_z)]
    cam_z = heads[:, SHAPE_DIM + 2:SHAPE_DIM + 3]
    t_z = K_VALUE * (1.0 / (1.0 + jnp.exp(-cam_z)))                         # (B, 1)

    # ---- 1x1 conv (+ folded eval-mode BN) + ReLU: ONE (B*HW, C_IN)x(C_IN, C_MID) ----
    x2d = x.reshape(bsz * HW, C_IN)                                         # bf16
    y2d = jnp.dot(x2d, convw_ref[...], preferred_element_type=jnp.float32)  # (B*HW, C_MID)
    y2d = jnp.maximum(y2d + convb_ref[...], 0.0)
    y = y2d.reshape(bsz, HW, C_MID)                                         # (B, HW, C_MID)

    # ---- bilinear joint sampling: canonical batched (J, HW) x (HW, C_MID) ----
    sampled = jax.lax.dot_general(bil_ref[...], y, (((2,), (1,)), ((0,), (0,))),
                                  preferred_element_type=jnp.float32)       # (B, J, C_MID)

    # ---- fused root(6)+hand(24) pose heads: ONE matmul with K = J*C_MID ----
    # feat = [sampled_j(C_MID) | joint_img_j(3)]_{j}; weights were split/reshaped in
    # pack_params to match this ordering.  Output columns are COMPONENT-MAJOR:
    # pose[:, k*N_ROT + r] = 6d component k of rotation r (r=0 root, r>=1 hand).
    sflat = sampled.reshape(bsz, JOINT_NUM * C_MID).astype(jnp.bfloat16)
    pose = (jnp.dot(sflat, wps_ref[...], preferred_element_type=jnp.float32)
            + jnp.dot(jimgf_ref[...], wpj_ref[...], preferred_element_type=jnp.float32)
            + poseb_ref[...])                                               # (B, 30)

    # ---- rot6d -> matrix -> quaternion -> axis-angle, all rotations at once ----
    # All ops below are elementwise on (B, N_ROT) lane groups (VPU/EUP).
    a1x, a1y, a1z = pose[:, 0 * N_ROT:1 * N_ROT], pose[:, 1 * N_ROT:2 * N_ROT], pose[:, 2 * N_ROT:3 * N_ROT]
    a2x, a2y, a2z = pose[:, 3 * N_ROT:4 * N_ROT], pose[:, 4 * N_ROT:5 * N_ROT], pose[:, 5 * N_ROT:6 * N_ROT]

    eps = 1e-12  # F.normalize eps clamp
    inv_n1 = pl.reciprocal(jnp.maximum(jnp.sqrt(a1x * a1x + a1y * a1y + a1z * a1z), eps))
    b1x, b1y, b1z = a1x * inv_n1, a1y * inv_n1, a1z * inv_n1
    dot12 = b1x * a2x + b1y * a2y + b1z * a2z
    u2x, u2y, u2z = a2x - dot12 * b1x, a2y - dot12 * b1y, a2z - dot12 * b1z
    inv_n2 = pl.reciprocal(jnp.maximum(jnp.sqrt(u2x * u2x + u2y * u2y + u2z * u2z), eps))
    b2x, b2y, b2z = u2x * inv_n2, u2y * inv_n2, u2z * inv_n2
    b3x = b1y * b2z - b1z * b2y
    b3y = b1z * b2x - b1x * b2z
    b3z = b1x * b2y - b1y * b2x

    m00, m01, m02 = b1x, b1y, b1z
    m10, m11, m12 = b2x, b2y, b2z
    m20, m21, m22 = b3x, b3y, b3z

    def sqrt_pos(v):  # _sqrt_positive_part
        return jnp.where(v > 0.0, jnp.sqrt(jnp.maximum(v, 0.0)), 0.0)

    q0 = sqrt_pos(1.0 + m00 + m11 + m22)
    q1 = sqrt_pos(1.0 + m00 - m11 - m22)
    q2 = sqrt_pos(1.0 - m00 + m11 - m22)
    q3 = sqrt_pos(1.0 - m00 - m11 + m22)

    # argmax over q_abs with first-max tie breaking (== F.one_hot(argmax) select)
    s0 = (q0 >= q1) & (q0 >= q2) & (q0 >= q3)
    s1 = (q1 >= q2) & (q1 >= q3)
    s2 = q2 >= q3

    def sel(v0, v1, v2, v3):
        return jnp.where(s0, v0, jnp.where(s1, v1, jnp.where(s2, v2, v3)))

    # Select the candidate NUMERATORS and denominator, then divide once (was ~22 divides).
    num_w = sel(q0 * q0, m21 - m12, m02 - m20, m10 - m01)
    num_x = sel(m21 - m12, q1 * q1, m10 + m01, m20 + m02)
    num_y = sel(m02 - m20, m10 + m01, q2 * q2, m21 + m12)
    num_z = sel(m10 - m01, m02 + m20, m12 + m21, q3 * q3)
    d_sel = 2.0 * jnp.maximum(sel(q0, q1, q2, q3), 0.1)

    # atan2 is invariant to the common positive scale d_sel, so use raw numerators.
    norms = jnp.sqrt(num_x * num_x + num_y * num_y + num_z * num_z)
    half = jnp.arctan2(norms, num_w)
    angles = 2.0 * half
    small = jnp.abs(angles) < 1e-6
    safe_ang = jnp.where(small, 1.0, angles)
    shoa = jnp.where(small, 0.5 - angles * angles / 48.0,
                     jnp.sin(safe_ang * 0.5) / safe_ang)
    # out = quaternion_xyz / shoa, with the candidate division folded in: one reciprocal.
    inv = pl.reciprocal(d_sel * shoa)                                       # exact (approx=False)
    ax, ay, az = num_x * inv, num_y * inv, num_z * inv                      # (B, N_ROT) each

    # ---- one lane-dense (B, 128) output slab, single store ----
    # cols [0:10]=shape, [10:13]=root_trans, [13:18]=aa_x, [18:23]=aa_y, [23:28]=aa_z
    pad = jnp.zeros((bsz, SLAB - SLAB_USED), jnp.float32)
    o_ref[...] = jnp.concatenate(
        [heads[:, :SHAPE_DIM + 2], t_z, ax, ay, az, pad], axis=-1)


# ------------------------------ JAX glue ------------------------------------
def _bilinear_weights(joint_xy, Hn, Wn):
    # grid_sample(align_corners=True, zero padding) as a dense (B, J, H*W) weight tensor.
    # (The PyTorch sample_joint_features normalize/denormalize cancels -> pixel coords.)
    x = joint_xy[..., 0]
    y = joint_xy[..., 1]
    x0 = jnp.floor(x)
    y0 = jnp.floor(y)
    x1 = x0 + 1.0
    y1 = y0 + 1.0
    wx1 = x - x0
    wx0 = 1.0 - wx1
    wy1 = y - y0
    wy0 = 1.0 - wy1
    xs = jnp.arange(Wn, dtype=jnp.float32)
    ys = jnp.arange(Hn, dtype=jnp.float32)

    def corner(xc, yc, w):
        inb = (xc >= 0) & (xc <= Wn - 1) & (yc >= 0) & (yc <= Hn - 1)
        w = jnp.where(inb, w, 0.0)
        ohx = (xs[None, None, :] == xc[..., None]).astype(jnp.float32)   # (B, J, W)
        ohy = (ys[None, None, :] == yc[..., None]).astype(jnp.float32)   # (B, J, H)
        return ohy[..., :, None] * ohx[..., None, :] * w[..., None, None]

    wgrid = (corner(x0, y0, wx0 * wy0) + corner(x1, y0, wx1 * wy0)
             + corner(x0, y1, wx0 * wy1) + corner(x1, y1, wx1 * wy1))
    Bn, Jn = joint_xy.shape[0], joint_xy.shape[1]
    return wgrid.reshape(Bn, Jn, Hn * Wn)


def rotation_net_forward(params, hand_feat, joint_img):
    Bn = hand_feat.shape[0]
    # NCHW -> (B, H*W, C_IN) NHWC view; bf16 inputs for the MXU matmuls (halves DMA bytes).
    x = jnp.transpose(hand_feat, (0, 2, 3, 1)).reshape(Bn, HW, C_IN).astype(jnp.bfloat16)
    bil = _bilinear_weights(joint_img[:, :, :2], H, W)   # (B, J, H*W) f32
    jimg_flat = joint_img.reshape(Bn, JOINT_NUM * 3)

    # TODO(synk): at production sizes (C_IN=2048, C_MID=512, J=21) add a grid over batch
    # (and C_MID tiles) with dimension_semantics=("parallel", ...) so v7x uses both
    # TensorCores and the per-TC VMEM working set stays under the 32 MiB scoped default;
    # gridless single-program is best at this toy size.
    slab = pl.pallas_call(
        _fused_forward_kernel,
        out_shape=jax.ShapeDtypeStruct((Bn, SLAB), jnp.float32),
        in_specs=[VMEM_SPEC] * 10,
        out_specs=VMEM_SPEC,
        compiler_params=pltpu.CompilerParams(vmem_limit_bytes=64 * 1024 * 1024),
    )(x, params["conv_w"], params["conv_b"], params["head_w"], params["head_b"],
      bil, jimg_flat, params["pose_w_feat"], params["pose_w_img"], params["pose_b"])

    shape_param = slab[:, :SHAPE_DIM]                    # (B, 10)
    root_trans = slab[:, SHAPE_DIM:SHAPE_DIM + 3]        # (B, 3)
    # axis-angle block is component-major: (B, 3, N_ROT) -> (B, N_ROT, 3)
    aa = slab[:, HEAD_DIM:HEAD_DIM + 3 * N_ROT].reshape(Bn, 3, N_ROT)
    aa = jnp.transpose(aa, (0, 2, 1))
    root_pose = aa[:, 0, :]                              # (B, 3)
    hand_pose = aa[:, 1:, :].reshape(Bn, -1)             # (B, (orig-1)*3)
    return root_pose, hand_pose, shape_param, root_trans


# --------------------------- deterministic init ------------------------------
def init_params(key):
    # Raw parameters in PyTorch layouts (Linear weight = (out, in), conv = (out, in)).
    ks = jax.random.split(key, 12)

    def nrm(k, shape, scale=0.02):
        return scale * jax.random.normal(k, shape, jnp.float32)

    return dict(
        conv_w=nrm(ks[0], (C_MID, C_IN)),
        conv_b=nrm(ks[1], (C_MID,)),
        bn_gamma=1.0 + 0.1 * jax.random.normal(ks[2], (C_MID,), jnp.float32),
        bn_beta=nrm(ks[3], (C_MID,)),
        bn_mean=nrm(ks[4], (C_MID,)),
        bn_var=1.0 + 0.1 * jax.random.uniform(ks[5], (C_MID,), jnp.float32),
        shape_w=nrm(ks[6], (SHAPE_DIM, C_IN)),
        shape_b=nrm(ks[7], (SHAPE_DIM,)),
        cam_w=nrm(ks[8], (3, C_IN)),
        cam_b=nrm(ks[9], (3,)),
        root_w=nrm(ks[10], (6, FEAT_DIM), scale=0.05),
        root_b=jnp.zeros((6,), jnp.float32),
        pose_w=nrm(ks[11], (POSE6_DIM, FEAT_DIM), scale=0.05),
        pose_b=jnp.zeros((POSE6_DIM,), jnp.float32),
    )


def pack_params(p):
    # Fold eval-mode BN into the 1x1 conv weight/bias; transpose to (C_IN, C_MID).
    scale = p["bn_gamma"] / jnp.sqrt(p["bn_var"] + 1e-5)                  # (C_MID,)
    conv_w = (p["conv_w"] * scale[:, None]).T                             # (C_IN, C_MID)
    conv_b = ((p["conv_b"] - p["bn_mean"]) * scale + p["bn_beta"]).reshape(1, C_MID)

    # Fuse shape + cam heads into one matmul.
    head_w = jnp.concatenate([p["shape_w"].T, p["cam_w"].T], axis=1)      # (C_IN, 13)
    head_b = jnp.concatenate([p["shape_b"], p["cam_b"]]).reshape(1, HEAD_DIM)

    # Fuse root + hand pose heads into one (FEAT_DIM, 30) matmul (rotation-major cols),
    # then reorder output columns COMPONENT-MAJOR: new col (k*N_ROT + r) <- old (r*6 + k).
    pose_w = jnp.concatenate([p["root_w"].T, p["pose_w"].T], axis=1)      # (FEAT_DIM, 30)
    pose_b = jnp.concatenate([p["root_b"], p["pose_b"]])                  # (30,)
    perm = jnp.asarray([r * 6 + k for k in range(6) for r in range(N_ROT)], jnp.int32)
    pose_w = pose_w[:, perm]
    pose_b = pose_b[perm].reshape(1, POSE_OUT)

    # Split the interleaved feature order feat = [sampled_j(C_MID) | joint_img_j(3)]_j
    # and flatten the sampled part to K = J*C_MID (matches in-kernel sampled.reshape()).
    w_j = pose_w.reshape(JOINT_NUM, C_MID + 3, POSE_OUT)
    pose_w_feat = w_j[:, :C_MID, :].reshape(JOINT_NUM * C_MID, POSE_OUT)
    pose_w_img = w_j[:, C_MID:, :].reshape(JOINT_NUM * 3, POSE_OUT)

    return dict(
        conv_w=conv_w.astype(jnp.bfloat16), conv_b=conv_b,
        head_w=head_w, head_b=head_b,
        pose_w_feat=pose_w_feat.astype(jnp.bfloat16),
        pose_w_img=pose_w_img,
        pose_b=pose_b,
    )


if __name__ == "__main__":
    key = jax.random.PRNGKey(0)
    k_param, k_feat, k_xy, k_z = jax.random.split(key, 4)

    params = pack_params(init_params(k_param))
    hand_feat = jax.random.normal(k_feat, (B, C_IN, H, W), jnp.float32)
    joint_xy = jax.random.uniform(k_xy, (B, JOINT_NUM, 2), jnp.float32,
                                  minval=0.0, maxval=float(W - 1))
    joint_z = jax.random.uniform(k_z, (B, JOINT_NUM, 1), jnp.float32,
                                 minval=0.0, maxval=1.0)
    joint_img = jnp.concatenate([joint_xy, joint_z], axis=-1)            # (B, J, 3)

    fwd = jax.jit(rotation_net_forward)
    root_pose, hand_pose, shape_param, root_trans = fwd(params, hand_feat, joint_img)
    jax.block_until_ready((root_pose, hand_pose, shape_param, root_trans))

    assert root_pose.shape == (B, 3)
    assert hand_pose.shape == (B, (ORIG_JOINT_NUM - 1) * 3)
    assert shape_param.shape == (B, SHAPE_DIM)
    assert root_trans.shape == (B, 3)
    assert bool(jnp.all(jnp.isfinite(root_pose))) and bool(jnp.all(jnp.isfinite(hand_pose)))
    print("KERNEL_OK")
</pallas_src>

<mosaic_0001>
module attributes {stable_mosaic.version = 11 : i64} {
  func.func @_fused_forward_kernel(%arg0: memref<2x64x32xbf16, #tpu.memory_space<vmem>>, %arg1: memref<32x16xbf16, #tpu.memory_space<vmem>>, %arg2: memref<1x16xf32, #tpu.memory_space<vmem>>, %arg3: memref<32x13xf32, #tpu.memory_space<vmem>>, %arg4: memref<1x13xf32, #tpu.memory_space<vmem>>, %arg5: memref<2x8x64xf32, #tpu.memory_space<vmem>>, %arg6: memref<2x24xf32, #tpu.memory_space<vmem>>, %arg7: memref<128x30xbf16, #tpu.memory_space<vmem>>, %arg8: memref<24x30xf32, #tpu.memory_space<vmem>>, %arg9: memref<1x30xf32, #tpu.memory_space<vmem>>, %arg10: memref<2x128xf32, #tpu.memory_space<vmem>>) attributes {dimension_semantics = [], scalar_prefetch = 0 : i64, scratch_operands = 0 : i64, tpu.core_type = #tpu.core_type<tc>} {
    %c0 = arith.constant 0 : index
    %c0_0 = arith.constant 0 : index
    %c0_1 = arith.constant 0 : index
    %0 = vector.load %arg0[%c0, %c0_0, %c0_1] : memref<2x64x32xbf16, #tpu.memory_space<vmem>>, vector<2x64x32xbf16>
    %1 = arith.extf %0 : vector<2x64x32xbf16> to vector<2x64x32xf32>
    %cst = arith.constant dense<0.000000e+00> : vector<2x32xf32>
    %2 = vector.multi_reduction <add>, %1, %cst [1] : vector<2x64x32xf32> to vector<2x32xf32>
    %cst_2 = arith.constant 6.400000e+01 : f32
    %3 = vector.broadcast %cst_2 : f32 to vector<2x32xf32>
    %4 = arith.divf %2, %3 : vector<2x32xf32>
    %c0_3 = arith.constant 0 : index
    %c0_4 = arith.constant 0 : index
    %5 = vector.load %arg3[%c0_3, %c0_4] : memref<32x13xf32, #tpu.memory_space<vmem>>, vector<32x13xf32>
    %cst_5 = arith.constant dense<0.000000e+00> : vector<2x13xf32>
    %6 = tpu.matmul %4, %5, %cst_5 {dimension_numbers = #tpu.dot_dimension_numbers<[1], [0], [0], [1], [0, 0, 1, 1], [], []>} : vector<2x32xf32>, vector<32x13xf32>, vector<2x13xf32> -> vector<2x13xf32>
    %c0_6 = arith.constant 0 : index
    %c0_7 = arith.constant 0 : index
    %7 = vector.load %arg4[%c0_6, %c0_7] : memref<1x13xf32, #tpu.memory_space<vmem>>, vector<1x13xf32>
    %8 = vector.broadcast %7 : vector<1x13xf32> to vector<2x13xf32>
    %9 = arith.addf %6, %8 : vector<2x13xf32>
    %10 = vector.extract_strided_slice %9 {offsets = [0, 12], sizes = [2, 1], strides = [1, 1]} : vector<2x13xf32> to vector<2x1xf32>
    %cst_8 = arith.constant 0.000000e+00 : f32
    %11 = vector.broadcast %cst_8 : f32 to vector<2x1xf32>
    %12 = arith.subf %11, %10 : vector<2x1xf32>
    %13 = math.exp %12 : vector<2x1xf32>
    %cst_9 = arith.constant 1.000000e+00 : f32
    %14 = vector.broadcast %cst_9 : f32 to vector<2x1xf32>
    %15 = arith.addf %14, %13 : vector<2x1xf32>
    %cst_10 = arith.constant 1.000000e+00 : f32
    %16 = vector.broadcast %cst_10 : f32 to vector<2x1xf32>
    %17 = arith.divf %16, %15 : vector<2x1xf32>
    %cst_11 = arith.constant 1.7578125 : f32
    %18 = vector.broadcast %cst_11 : f32 to vector<2x1xf32>
    %19 = arith.mulf %18, %17 : vector<2x1xf32>
    %20 = vector.shape_cast %0 : vector<2x64x32xbf16> to vector<128x32xbf16>
    %c0_12 = arith.constant 0 : index
    %c0_13 = arith.constant 0 : index
    %21 = vector.load %arg1[%c0_12, %c0_13] : memref<32x16xbf16, #tpu.memory_space<vmem>>, vector<32x16xbf16>
    %cst_14 = arith.constant dense<0.000000e+00> : vector<128x16xf32>
    %22 = tpu.matmul %20, %21, %cst_14 {dimension_numbers = #tpu.dot_dimension_numbers<[1], [0], [0], [1], [0, 0, 1, 1], [], []>} : vector<128x32xbf16>, vector<32x16xbf16>, vector<128x16xf32> -> vector<128x16xf32>
    %c0_15 = arith.constant 0 : index
    %c0_16 = arith.constant 0 : index
    %23 = vector.load %arg2[%c0_15, %c0_16] : memref<1x16xf32, #tpu.memory_space<vmem>>, vector<1x16xf32>
    %24 = vector.broadcast %23 : vector<1x16xf32> to vector<128x16xf32>
    %25 = arith.addf %22, %24 : vector<128x16xf32>
    %cst_17 = arith.constant 0.000000e+00 : f32
    %26 = vector.broadcast %cst_17 : f32 to vector<128x16xf32>
    %27 = arith.maximumf %25, %26 : vector<128x16xf32>
    %28 = vector.shape_cast %27 : vector<128x16xf32> to vector<2x64x16xf32>
    %c0_18 = arith.constant 0 : index
    %c0_19 = arith.constant 0 : index
    %c0_20 = arith.constant 0 : index
    %29 = vector.load %arg5[%c0_18, %c0_19, %c0_20] : memref<2x8x64xf32, #tpu.memory_space<vmem>>, vector<2x8x64xf32>
    %cst_21 = arith.constant dense<0.000000e+00> : vector<2x8x16xf32>
    %30 = tpu.matmul %29, %28, %cst_21 {dimension_numbers = #tpu.dot_dimension_numbers<[2], [1], [1], [2], [0, 0, 0, 1, 1, 2], [0], [0]>} : vector<2x8x64xf32>, vector<2x64x16xf32>, vector<2x8x16xf32> -> vector<2x8x16xf32>
    %31 = vector.shape_cast %30 : vector<2x8x16xf32> to vector<2x128xf32>
    %32 = arith.truncf %31 : vector<2x128xf32> to vector<2x128xbf16>
    %c0_22 = arith.constant 0 : index
    %c0_23 = arith.constant 0 : index
    %33 = vector.load %arg7[%c0_22, %c0_23] : memref<128x30xbf16, #tpu.memory_space<vmem>>, vector<128x30xbf16>
    %cst_24 = arith.constant dense<0.000000e+00> : vector<2x30xf32>
    %34 = tpu.matmul %32, %33, %cst_24 {dimension_numbers = #tpu.dot_dimension_numbers<[1], [0], [0], [1], [0, 0, 1, 1], [], []>} : vector<2x128xbf16>, vector<128x30xbf16>, vector<2x30xf32> -> vector<2x30xf32>
    %c0_25 = arith.constant 0 : index
    %c0_26 = arith.constant 0 : index
    %35 = vector.load %arg6[%c0_25, %c0_26] : memref<2x24xf32, #tpu.memory_space<vmem>>, vector<2x24xf32>
    %c0_27 = arith.constant 0 : index
    %c0_28 = arith.constant 0 : index
    %36 = vector.load %arg8[%c0_27, %c0_28] : memref<24x30xf32, #tpu.memory_space<vmem>>, vector<24x30xf32>
    %cst_29 = arith.constant dense<0.000000e+00> : vector<2x30xf32>
    %37 = tpu.matmul %35, %36, %cst_29 {dimension_numbers = #tpu.dot_dimension_numbers<[1], [0], [0], [1], [0, 0, 1, 1], [], []>} : vector<2x24xf32>, vector<24x30xf32>, vector<2x30xf32> -> vector<2x30xf32>
    %38 = arith.addf %34, %37 : vector<2x30xf32>
    %c0_30 = arith.constant 0 : index
    %c0_31 = arith.constant 0 : index
    %39 = vector.load %arg9[%c0_30, %c0_31] : memref<1x30xf32, #tpu.memory_space<vmem>>, vector<1x30xf32>
    %40 = vector.broadcast %39 : vector<1x30xf32> to vector<2x30xf32>
    %41 = arith.addf %38, %40 : vector<2x30xf32>
    %42 = vector.extract_strided_slice %41 {offsets = [0, 0], sizes = [2, 5], strides = [1, 1]} : vector<2x30xf32> to vector<2x5xf32>
    %43 = vector.extract_strided_slice %41 {offsets = [0, 5], sizes = [2, 5], strides = [1, 1]} : vector<2x30xf32> to vector<2x5xf32>
    %44 = vector.extract_strided_slice %41 {offsets = [0, 10], sizes = [2, 5], strides = [1, 1]} : vector<2x30xf32> to vector<2x5xf32>
    %45 = vector.extract_strided_slice %41 {offsets = [0, 15], sizes = [2, 5], strides = [1, 1]} : vector<2x30xf32> to vector<2x5xf32>
    %46 = vector.extract_strided_slice %41 {offsets = [0, 20], sizes = [2, 5], strides = [1, 1]} : vector<2x30xf32> to vector<2x5xf32>
    %47 = vector.extract_strided_slice %41 {offsets = [0, 25], sizes = [2, 5], strides = [1, 1]} : vector<2x30xf32> to vector<2x5xf32>
    %48 = arith.mulf %42, %42 : vector<2x5xf32>
    %49 = arith.mulf %43, %43 : vector<2x5xf32>
    %50 = arith.addf %48, %49 : vector<2x5xf32>
    %51 = arith.mulf %44, %44 : vector<2x5xf32>
    %52 = arith.addf %50, %51 : vector<2x5xf32>
    %53 = math.sqrt %52 : vector<2x5xf32>
    %cst_32 = arith.constant 9.99999996E-13 : f32
    %54 = vector.broadcast %cst_32 : f32 to vector<2x5xf32>
    %55 = arith.maximumf %53, %54 : vector<2x5xf32>
    %56 = tpu.reciprocal %55 : vector<2x5xf32> -> vector<2x5xf32>
    %57 = arith.mulf %42, %56 : vector<2x5xf32>
    %58 = arith.mulf %43, %56 : vector<2x5xf32>
    %59 = arith.mulf %44, %56 : vector<2x5xf32>
    %60 = arith.mulf %57, %45 : vector<2x5xf32>
    %61 = arith.mulf %58, %46 : vector<2x5xf32>
    %62 = arith.addf %60, %61 : vector<2x5xf32>
    %63 = arith.mulf %59, %47 : vector<2x5xf32>
    %64 = arith.addf %62, %63 : vector<2x5xf32>
    %65 = arith.mulf %64, %57 : vector<2x5xf32>
    %66 = arith.subf %45, %65 : vector<2x5xf32>
    %67 = arith.mulf %64, %58 : vector<2x5xf32>
    %68 = arith.subf %46, %67 : vector<2x5xf32>
    %69 = arith.mulf %64, %59 : vector<2x5xf32>
    %70 = arith.subf %47, %69 : vector<2x5xf32>
    %71 = arith.mulf %66, %66 : vector<2x5xf32>
    %72 = arith.mulf %68, %68 : vector<2x5xf32>
    %73 = arith.addf %71, %72 : vector<2x5xf32>
    %74 = arith.mulf %70, %70 : vector<2x5xf32>
    %75 = arith.addf %73, %74 : vector<2x5xf32>
    %76 = math.sqrt %75 : vector<2x5xf32>
    %cst_33 = arith.constant 9.99999996E-13 : f32
    %77 = vector.broadcast %cst_33 : f32 to vector<2x5xf32>
    %78 = arith.maximumf %76, %77 : vector<2x5xf32>
    %79 = tpu.reciprocal %78 : vector<2x5xf32> -> vector<2x5xf32>
    %80 = arith.mulf %66, %79 : vector<2x5xf32>
    %81 = arith.mulf %68, %79 : vector<2x5xf32>
    %82 = arith.mulf %70, %79 : vector<2x5xf32>
    %83 = arith.mulf %58, %82 : vector<2x5xf32>
    %84 = arith.mulf %59, %81 : vector<2x5xf32>
    %85 = arith.subf %83, %84 : vector<2x5xf32>
    %86 = arith.mulf %59, %80 : vector<2x5xf32>
    %87 = arith.mulf %57, %82 : vector<2x5xf32>
    %88 = arith.subf %86, %87 : vector<2x5xf32>
    %89 = arith.mulf %57, %81 : vector<2x5xf32>
    %90 = arith.mulf %58, %80 : vector<2x5xf32>
    %91 = arith.subf %89, %90 : vector<2x5xf32>
    %cst_34 = arith.constant 1.000000e+00 : f32
    %92 = vector.broadcast %cst_34 : f32 to vector<2x5xf32>
    %93 = arith.addf %92, %57 : vector<2x5xf32>
    %94 = arith.addf %93, %81 : vector<2x5xf32>
    %95 = arith.addf %94, %91 : vector<2x5xf32>
    %cst_35 = arith.constant 0.000000e+00 : f32
    %96 = vector.broadcast %cst_35 : f32 to vector<2x5xf32>
    %97 = arith.cmpf ogt, %95, %96 : vector<2x5xf32>
    %cst_36 = arith.constant 0.000000e+00 : f32
    %98 = vector.broadcast %cst_36 : f32 to vector<2x5xf32>
    %99 = arith.maximumf %95, %98 : vector<2x5xf32>
    %100 = math.sqrt %99 : vector<2x5xf32>
    %cst_37 = arith.constant 0.000000e+00 : f32
    %101 = vector.broadcast %cst_37 : f32 to vector<2x5xf32>
    %102 = arith.select %97, %100, %101 : vector<2x5xi1>, vector<2x5xf32>
    %cst_38 = arith.constant 1.000000e+00 : f32
    %103 = vector.broadcast %cst_38 : f32 to vector<2x5xf32>
    %104 = arith.addf %103, %57 : vector<2x5xf32>
    %105 = arith.subf %104, %81 : vector<2x5xf32>
    %106 = arith.subf %105, %91 : vector<2x5xf32>
    %cst_39 = arith.constant 0.000000e+00 : f32
    %107 = vector.broadcast %cst_39 : f32 to vector<2x5xf32>
    %108 = arith.cmpf ogt, %106, %107 : vector<2x5xf32>
    %cst_40 = arith.constant 0.000000e+00 : f32
    %109 = vector.broadcast %cst_40 : f32 to vector<2x5xf32>
    %110 = arith.maximumf %106, %109 : vector<2x5xf32>
    %111 = math.sqrt %110 : vector<2x5xf32>
    %cst_41 = arith.constant 0.000000e+00 : f32
    %112 = vector.broadcast %cst_41 : f32 to vector<2x5xf32>
    %113 = arith.select %108, %111, %112 : vector<2x5xi1>, vector<2x5xf32>
    %cst_42 = arith.constant 1.000000e+00 : f32
    %114 = vector.broadcast %cst_42 : f32 to vector<2x5xf32>
    %115 = arith.subf %114, %57 : vector<2x5xf32>
    %116 = arith.addf %115, %81 : vector<2x5xf32>
    %117 = arith.subf %116, %91 : vector<2x5xf32>
    %cst_43 = arith.constant 0.000000e+00 : f32
    %118 = vector.broadcast %cst_43 : f32 to vector<2x5xf32>
    %119 = arith.cmpf ogt, %117, %118 : vector<2x5xf32>
    %cst_44 = arith.constant 0.000000e+00 : f32
    %120 = vector.broadcast %cst_44 : f32 to vector<2x5xf32>
    %121 = arith.maximumf %117, %120 : vector<2x5xf32>
    %122 = math.sqrt %121 : vector<2x5xf32>
    %cst_45 = arith.constant 0.000000e+00 : f32
    %123 = vector.broadcast %cst_45 : f32 to vector<2x5xf32>
    %124 = arith.select %119, %122, %123 : vector<2x5xi1>, vector<2x5xf32>
    %cst_46 = arith.constant 1.000000e+00 : f32
    %125 = vector.broadcast %cst_46 : f32 to vector<2x5xf32>
    %126 = arith.subf %125, %57 : vector<2x5xf32>
    %127 = arith.subf %126, %81 : vector<2x5xf32>
    %128 = arith.addf %127, %91 : vector<2x5xf32>
    %cst_47 = arith.constant 0.000000e+00 : f32
    %129 = vector.broadcast %cst_47 : f32 to vector<2x5xf32>
    %130 = arith.cmpf ogt, %128, %129 : vector<2x5xf32>
    %cst_48 = arith.constant 0.000000e+00 : f32
    %131 = vector.broadcast %cst_48 : f32 to vector<2x5xf32>
    %132 = arith.maximumf %128, %131 : vector<2x5xf32>
    %133 = math.sqrt %132 : vector<2x5xf32>
    %cst_49 = arith.constant 0.000000e+00 : f32
    %134 = vector.broadcast %cst_49 : f32 to vector<2x5xf32>
    %135 = arith.select %130, %133, %134 : vector<2x5xi1>, vector<2x5xf32>
    %136 = arith.cmpf oge, %102, %113 : vector<2x5xf32>
    %137 = arith.cmpf oge, %102, %124 : vector<2x5xf32>
    %138 = arith.andi %136, %137 : vector<2x5xi1>
    %139 = arith.cmpf oge, %102, %135 : vector<2x5xf32>
    %140 = arith.andi %138, %139 : vector<2x5xi1>
    %141 = arith.cmpf oge, %113, %124 : vector<2x5xf32>
    %142 = arith.cmpf oge, %113, %135 : vector<2x5xf32>
    %143 = arith.andi %141, %142 : vector<2x5xi1>
    %144 = arith.cmpf oge, %124, %135 : vector<2x5xf32>
    %145 = arith.mulf %102, %102 : vector<2x5xf32>
    %146 = arith.subf %88, %82 : vector<2x5xf32>
    %147 = arith.subf %59, %85 : vector<2x5xf32>
    %148 = arith.subf %80, %58 : vector<2x5xf32>
    %149 = arith.select %144, %147, %148 : vector<2x5xi1>, vector<2x5xf32>
    %150 = arith.select %143, %146, %149 : vector<2x5xi1>, vector<2x5xf32>
    %151 = arith.select %140, %145, %150 : vector<2x5xi1>, vector<2x5xf32>
    %152 = arith.subf %88, %82 : vector<2x5xf32>
    %153 = arith.mulf %113, %113 : vector<2x5xf32>
    %154 = arith.addf %80, %58 : vector<2x5xf32>
    %155 = arith.addf %85, %59 : vector<2x5xf32>
    %156 = arith.select %144, %154, %155 : vector<2x5xi1>, vector<2x5xf32>
    %157 = arith.select %143, %153, %156 : vector<2x5xi1>, vector<2x5xf32>
    %158 = arith.select %140, %152, %157 : vector<2x5xi1>, vector<2x5xf32>
    %159 = arith.subf %59, %85 : vector<2x5xf32>
    %160 = arith.addf %80, %58 : vector<2x5xf32>
    %161 = arith.mulf %124, %124 : vector<2x5xf32>
    %162 = arith.addf %88, %82 : vector<2x5xf32>
    %163 = arith.select %144, %161, %162 : vector<2x5xi1>, vector<2x5xf32>
    %164 = arith.select %143, %160, %163 : vector<2x5xi1>, vector<2x5xf32>
    %165 = arith.select %140, %159, %164 : vector<2x5xi1>, vector<2x5xf32>
    %166 = arith.subf %80, %58 : vector<2x5xf32>
    %167 = arith.addf %59, %85 : vector<2x5xf32>
    %168 = arith.addf %82, %88 : vector<2x5xf32>
    %169 = arith.mulf %135, %135 : vector<2x5xf32>
    %170 = arith.select %144, %168, %169 : vector<2x5xi1>, vector<2x5xf32>
    %171 = arith.select %143, %167, %170 : vector<2x5xi1>, vector<2x5xf32>
    %172 = arith.select %140, %166, %171 : vector<2x5xi1>, vector<2x5xf32>
    %173 = arith.select %144, %124, %135 : vector<2x5xi1>, vector<2x5xf32>
    %174 = arith.select %143, %113, %173 : vector<2x5xi1>, vector<2x5xf32>
    %175 = arith.select %140, %102, %174 : vector<2x5xi1>, vector<2x5xf32>
    %cst_50 = arith.constant 1.000000e-01 : f32
    %176 = vector.broadcast %cst_50 : f32 to vector<2x5xf32>
    %177 = arith.maximumf %175, %176 : vector<2x5xf32>
    %cst_51 = arith.constant 2.000000e+00 : f32
    %178 = vector.broadcast %cst_51 : f32 to vector<2x5xf32>
    %179 = arith.mulf %178, %177 : vector<2x5xf32>
    %180 = arith.mulf %158, %158 : vector<2x5xf32>
    %181 = arith.mulf %165, %165 : vector<2x5xf32>
    %182 = arith.addf %180, %181 : vector<2x5xf32>
    %183 = arith.mulf %172, %172 : vector<2x5xf32>
    %184 = arith.addf %182, %183 : vector<2x5xf32>
    %185 = math.sqrt %184 : vector<2x5xf32>
    %186 = math.atan2 %185, %151 : vector<2x5xf32>
    %cst_52 = arith.constant 2.000000e+00 : f32
    %187 = vector.broadcast %cst_52 : f32 to vector<2x5xf32>
    %188 = arith.mulf %187, %186 : vector<2x5xf32>
    %189 = math.absf %188 : vector<2x5xf32>
    %cst_53 = arith.constant 9.99999997E-7 : f32
    %190 = vector.broadcast %cst_53 : f32 to vector<2x5xf32>
    %191 = arith.cmpf olt, %189, %190 : vector<2x5xf32>
    %cst_54 = arith.constant 1.000000e+00 : f32
    %192 = vector.broadcast %cst_54 : f32 to vector<2x5xf32>
    %193 = arith.select %191, %192, %188 : vector<2x5xi1>, vector<2x5xf32>
    %194 = arith.mulf %188, %188 : vector<2x5xf32>
    %cst_55 = arith.constant 4.800000e+01 : f32
    %195 = vector.broadcast %cst_55 : f32 to vector<2x5xf32>
    %196 = arith.divf %194, %195 : vector<2x5xf32>
    %cst_56 = arith.constant 5.000000e-01 : f32
    %197 = vector.broadcast %cst_56 : f32 to vector<2x5xf32>
    %198 = arith.subf %197, %196 : vector<2x5xf32>
    %cst_57 = arith.constant 5.000000e-01 : f32
    %199 = vector.broadcast %cst_57 : f32 to vector<2x5xf32>
    %200 = arith.mulf %193, %199 : vector<2x5xf32>
    %201 = math.sin %200 : vector<2x5xf32>
    %202 = arith.divf %201, %193 : vector<2x5xf32>
    %203 = arith.select %191, %198, %202 : vector<2x5xi1>, vector<2x5xf32>
    %204 = arith.mulf %179, %203 : vector<2x5xf32>
    %205 = tpu.reciprocal %204 : vector<2x5xf32> -> vector<2x5xf32>
    %206 = arith.mulf %158, %205 : vector<2x5xf32>
    %207 = arith.mulf %165, %205 : vector<2x5xf32>
    %208 = arith.mulf %172, %205 : vector<2x5xf32>
    %cst_58 = arith.constant 0.000000e+00 : f32
    %209 = vector.broadcast %cst_58 : f32 to vector<2x100xf32>
    %210 = vector.extract_strided_slice %9 {offsets = [0, 0], sizes = [2, 12], strides = [1, 1]} : vector<2x13xf32> to vector<2x12xf32>
    %211 = tpu.concatenate %210, %19, %206, %207, %208, %209 in 1 : vector<2x12xf32>, vector<2x1xf32>, vector<2x5xf32>, vector<2x5xf32>, vector<2x5xf32>, vector<2x100xf32> -> vector<2x128xf32>
    %c0_59 = arith.constant 0 : index
    %c0_60 = arith.constant 0 : index
    %212 = vector.load %arg10[%c0_59, %c0_60] : memref<2x128xf32, #tpu.memory_space<vmem>>, vector<2x128xf32>
    tpu.vector_store %arg10[%c0_59, %c0_60], %211 {strides = array<i32>} : memref<2x128xf32, #tpu.memory_space<vmem>>, vector<2x128xf32>,
    return
  }
}

</mosaic_0001>

<bundles_post_ra>
// kernel: rotation_net_forward.1
= control target key start
LH: loop header
LB: loop body
LE: loop exit
PB: predicated region body
PF: predicated region fallthrough
CT: control target
= control target key end

     0   :  { %v1604_v0 = vmov 0.0   ;;  %vm1605_vm0 = vmmov 0   ;;  %vm68_vm1 = vcmask 261120   ;;  %vm127_vm2 = vcmask 1041409   ;;  %s1608_s22 = smov 32   ;;  %s1610_s23 = smov 16   ;;  %s2096_s3 = inlined_call_operand.vmem [shape: f32[32,13], index: 3, kind: input, shape index: {}]   ;;  %s2097_s0 = inlined_call_operand.vmem [shape: bf16[2,64,32], index: 0, kind: input, shape index: {}]   ;;  %s2098_s1 = inlined_call_operand.vmem [shape: bf16[32,16], index: 1, kind: input, shape index: {}]   ;;  %s2099_s2 = inlined_call_operand.vmem [shape: f32[1,16], index: 2, kind: input, shape index: {}]   ;;  %s2100_s5 = inlined_call_operand.vmem [shape: f32[2,8,64], index: 5, kind: input, shape index: {}]   ;;  %s2101_s7 = inlined_call_operand.vmem [shape: bf16[128,30], index: 7, kind: input, shape index: {}]   ;;  %s2102_s8 = inlined_call_operand.vmem [shape: f32[24,30], index: 8, kind: input, shape index: {}]   ;;  %s2103_s6 = inlined_call_operand.vmem [shape: f32[2,24], index: 6, kind: input, shape index: {}]   ;;  %s2104_s9 = inlined_call_operand.vmem [shape: f32[1,30], index: 9, kind: input, shape index: {}]   ;;  %s2105_s4 = inlined_call_operand.vmem [shape: f32[1,13], index: 4, kind: input, shape index: {}]   ;;  %s2106_s10 = inlined_call_operand.vmem [shape: f32[2,128], index: 10, kind: output, shape index: {}]  }
   0x1   :  { %1413 = vmatprep.subr.mxu1 %v1604_v0  ;;  %v117_v1 = vld [vmem:[%s2096_s3 + $0x18] sm:$0xff]  ;;  %v116_v2 = vld [vmem:[%s2096_s3 + $0x10] sm:$0xff]  ;;  %1421 = vmatprep.mubr.msk.f32.mxu1 %vm1605_vm0, %v1604_v0  ;;  %v115_v3 = vld [vmem:[%s2096_s3 + $0x8] sm:$0xff]  ;;  %vm410_vm3 = vcmask 523264   ;;  %vm684_vm4 = vcmask 195584   ;;  %s1613_s24 = smov 96  }
   0x2   :  { %1414 = vmatpush3.msra.mxu1 %v117_v1  ;;  %1463 = vmatprep.subr.mxu0 %v1604_v0  ;;  %v1707_v4 = vld [vmem:[%s2097_s0] sm:$0xff]   ;;  %v1712_v5 = vld [vmem:[%s2097_s0 + $0x8] sm:$0xff]   ;;  %v1719_v6 = vld [vmem:[%s2097_s0 + $0x10] sm:$0xff]   ;;  %s1614_s25 = smov 112   ;;  %vm651_vm5 = vcmask 130048   ;;  %vm654_vm6 = vcmask 392192  }
   0x3   :  { %1415 = vmatprep.subr.mxu1 %v1604_v0  ;;  %1479 = vmatprep.mubr.msk.f32.mxu0 %vm1605_vm0, %v1604_v0  ;;  %v1724_v7 = vld [vmem:[%s2097_s0 + $0x20] sm:$0xff]   ;;  %v52_v8 = vunpack.c.l.bf16 %v1707_v4  ;;  %v53_v9 = vunpack.c.h.bf16 %v1707_v4  ;;  %v54_v10 = vunpack.c.l.bf16 %v1712_v5  ;;  %v1736_v12 = vld [vmem:[%s2098_s1 + $0x8] sm:$0xff]   ;;  %v1746_v14 = vld [vmem:[%s2097_s0 + $0x30] sm:$0xff]   ;;  %v55_v15 = vunpack.c.h.bf16 %v1712_v5  ;;  %s1615_s27 = smov 118   ;;  %s1616_s28 = smov 123  }
   0x4   :  { %1416 = vmatpush3.msra.mxu1 %v116_v2  ;;  %v114_v11 = vld [vmem:[%s2096_s3] sm:$0xff]  ;;  %v1741_v13 = vld [vmem:[%s2097_s0 + $0x28] sm:$0xff]   ;;  %v60_v16 = vunpack.c.l.bf16 %v1724_v7  ;;  %v61_v17 = vunpack.c.h.bf16 %v1724_v7  ;;  %v56_v19 = vunpack.c.l.bf16 %v1719_v6  ;;  %v42_v24 = vld [vmem:[%s2097_s0 + $0x18] sm:$0xff]   ;;  %v57_v25 = vunpack.c.h.bf16 %v1719_v6  ;;  %s1618_s29 = smov 5   ;;  %s1619_s30 = smov 113  }
   0x5   :  { %1417 = vmatprep.subr.mxu1 %v1604_v0  ;;  %v62_v18 = vunpack.c.l.bf16 %v1741_v13  ;;  %v63_v20 = vunpack.c.h.bf16 %v1741_v13  ;;  %v69_v21 = vsel %vm68_vm1, %v52_v8, 0.0  ;;  %v70_v22 = vsel %vm68_vm1, %v53_v9, 0.0  ;;  %v50_v32 = vld [vmem:[%s2097_s0 + $0x38] sm:$0xff]   ;;  %s1620_s11 = smov 25   ;;  %s1621_s12 = smov 20  }
   0x6   :  { %1418 = vmatpush3.msra.mxu1 %v115_v3  ;;  %v72_v23 = vsel %vm68_vm1, %v54_v10, 0.0  ;;  %v64_v26 = vunpack.c.l.bf16 %v1746_v14  ;;  %v71_v27 = vadd.f32 %v70_v22, %v69_v21  ;;  %v74_v28 = vsel %vm68_vm1, %v55_v15, 0.0  ;;  %s1622_s13 = smov 15   ;;  %s1623_s14 = smov 103  }
   0x7   :  { %1419 = vmatprep.subr.mxu1 %v1604_v0  ;;  %v90_v29 = vsel %vm68_vm1, %v60_v16, 0.0  ;;  %v91_v30 = vsel %vm68_vm1, %v61_v17, 0.0  ;;  %v93_v31 = vsel %vm68_vm1, %v62_v18, 0.0  ;;  %v58_v35 = vunpack.c.l.bf16 %v42_v24  ;;  %v1547_v18 = vld [vmem:[%s2098_s1] sm:$0xff]   ;;  %s1624_s3 = smov 108   ;;  %s1632_s15 = smov 18  }
   0x8   :  { %1420 = vmatpush3.msra.mxu1 %v114_v11  ;;  %v73_v33 = vadd.f32 %v72_v23, %v71_v27  ;;  %v92_v34 = vadd.f32 %v91_v30, %v90_v29  ;;  %v65_v36 = vunpack.c.h.bf16 %v1746_v14  ;;  %v76_v37 = vsel %vm68_vm1, %v56_v19, 0.0  ;;  %s1633_s16 = smov 13   ;;  %s1634_s17 = smov 23  }
   0x9   :  { %1424 = vmatprep.subr.bf16.mxu1 %v1736_v12  ;;  %v95_v38 = vsel %vm68_vm1, %v63_v20, 0.0  ;;  %v59_v41 = vunpack.c.h.bf16 %v42_v24  ;;  %v66_v42 = vunpack.c.l.bf16 %v50_v32  ;;  %v78_v43 = vsel %vm68_vm1, %v57_v25, 0.0 }
   0xa   :  { %v75_v39 = vadd.f32 %v74_v28, %v73_v33  ;;  %v94_v40 = vadd.f32 %v93_v31, %v92_v34  ;;  %v97_v44 = vsel %vm68_vm1, %v64_v26, 0.0  ;;  %v67_v47 = vunpack.c.h.bf16 %v50_v32 }
   0xb   :  { %v80_v48 = vsel %vm68_vm1, %v58_v35, 0.0  ;;  %v99_v49 = vsel %vm68_vm1, %v65_v36, 0.0  ;;  %v82_v52 = vsel %vm68_vm1, %v59_v41, 0.0  ;;  %v101_v53 = vsel %vm68_vm1, %v66_v42, 0.0 }
   0xc   :  { %v77_v45 = vadd.f32 %v76_v37, %v75_v39  ;;  %v96_v46 = vadd.f32 %v95_v38, %v94_v40  ;;  %v103_v56 = vsel %vm68_vm1, %v67_v47, 0.0  ;;  %vm657_vm7 = vcmask 654336  }
   0xd   :  { %vm659_vm8 = vcmask 785408   ;;  %vm661_vm9 = vcmask 916480  }
   0xe   :  { %v79_v50 = vadd.f32 %v78_v43, %v77_v45  ;;  %v98_v51 = vadd.f32 %v97_v44, %v96_v46 }
  0x10   :  { %v81_v54 = vadd.f32 %v80_v48, %v79_v50  ;;  %v100_v55 = vadd.f32 %v99_v49, %v98_v51  ;;  %v408_v49 = vld [vmem:[%s2100_s5] sm:$0xff] }
  0x12   :  { %v83_v57 = vadd.f32 %v82_v52, %v81_v54  ;;  %v102_v58 = vadd.f32 %v101_v53, %v100_v55 }
  0x14   :  { %v84_v59 = vrot.slane %v83_v57, 4  ;;  %v104_v60 = vadd.f32 %v103_v56, %v102_v58 }
  0x16   :  { %v85_v61 = vadd.f32 %v84_v59, %v83_v57  ;;  %v105_v62 = vrot.slane %v104_v60, 4 }
  0x18   :  { %v86_v63 = vrot.slane %v85_v61, 2  ;;  %v106_v1 = vadd.f32 %v105_v62, %v104_v60 }
  0x1a   :  { %v87_v2 = vadd.f32 %v86_v63, %v85_v61  ;;  %v107_v3 = vrot.slane %v106_v1, 2 }
  0x1c   :  { %v88_v8 = vrot.slane %v87_v2, 1  ;;  %v108_v9 = vadd.f32 %v107_v3, %v106_v1  ;;  %v1556_v3 = vld [vmem:[%s2101_s7 + $0x38] sm:$0xff]  }
  0x1e   :  { %v89_v10 = vadd.f32 %v88_v8, %v87_v2  ;;  %v109_v11 = vrot.slane %v108_v9, 1  ;;  %v409_v2 = vld [vmem:[%s2100_s5 + $0x8] sm:$0xff]  ;;  %v1557_v8 = vld [vmem:[%s2101_s7 + $0x30] sm:$0xff]  }
  0x20   :  { %v110_v15 = vadd.f32 %v109_v11, %v108_v9  ;;  %v112_v16 = vmul.f32 0.015625, %v89_v10  ;;  %v1558_v9 = vld [vmem:[%s2101_s7 + $0x28] sm:$0xff]   ;;  %v1559_v10 = vld [vmem:[%s2101_s7 + $0x20] sm:$0xff]  }
  0x22   :  { %v113_v17 = vmul.f32 0.015625, %v110_v15 }
  0x24   :  { %v128_v19 = vsel %vm127_vm2, %v113_v17, %v112_v16  ;;  %v1606_v16 = vmov 1983009808  }
  0x25   :  { %1422 = vmatmul.mubr.msk.f32.vlgmr.msra.gmra.mxu1 %vm68_vm1, %v128_v19  ;;  %v559_v17 = vunpack.c.l.s4 %v1606_v16 }
  0x26   :  { %1425 = vmatpush3.bf16.msra.mxu1 %v1736_v12  ;;  %1428 = vmatprep.mubr.msk.bf16.mxu1 %vm68_vm1, %v1707_v4 }
  0x27   :  { %1426 = vmatprep.subr.bf16.mxu1 %v1547_v18  ;;  %v560_v19 = vunpack.c.0.s8 %v559_v17 }
  0x2a   :  { %1427 = vmatpush3.bf16.msra.mxu1 %v1547_v18  ;;  %v561_v18 = vlaneseq }
  0x2b   :  { %1444 = vmatprep.subr.mxu1 %v1604_v0 }
  0x2d   :  { %1429 = vmatmul.mubr.msk.bf16.vlgmr.msra.gmra.mxu1 %vm68_vm1, %v1712_v5 }
  0x2e   :  { %1432 = vmatprep.mubr.msk.bf16.mxu1 %vm68_vm1, %v1719_v6 }
  0x35   :  { %1433 = vmatmul.mubr.msk.bf16.gmra.mxu1 %vm68_vm1, %v42_v24 }
  0x36   :  { %1436 = vmatprep.mubr.msk.bf16.mxu1 %vm68_vm1, %v1724_v7 }
  0x3d   :  { %1437 = vmatmul.mubr.msk.bf16.gmra.mxu1 %vm68_vm1, %v1741_v13  ;;  %v1808_v13 = vld [vmem:[%s2099_s2] ss:$0 sm:$0xff] }
  0x3e   :  { %1440 = vmatprep.mubr.msk.bf16.mxu1 %vm68_vm1, %v1746_v14 }
  0x45   :  { %1441 = vmatmul.mubr.msk.bf16.gmra.mxu1 %vm68_vm1, %v50_v32 }
  0x46   :  { %1460 = vmatprep.mubr.msk.f32.mxu1 %vm1605_vm0, %v1604_v0 }
  0xe5   :  { %v1803_v4 = vpop.f32.mrf.mxu1 }
  0xe7   :  { %v1423_v5 = vpop.f32.mrf.mxu1 }
  0xe8   :  { %v562_v5 = vshrl.u32 %v561_v18, 7 }
  0xed   :  { %v1430_v6 = vpop.f32.mrf.mxu1 }
  0xee   :  { %v338_v35 = vadd.f32 %v1430_v6, %v1808_v13  ;;  %v1560_v6 = vld [vmem:[%s2101_s7 + $0x18] sm:$0xff]  }
  0xef   :  { %v329_v12 = vpop.f32.mrf.mxu1 }
  0xf0   :  { %v394_v41 = vmax.f32 %v338_v35, 0.0  ;;  %v330_v42 = vadd.f32 %v1808_v13, %v329_v12  ;;  %v1607_v12 = vmov 1934713408   ;;  %v1563_v35 = vld [vmem:[%s2101_s7] sm:$0xff]  }
  0xf1   :  { %v1431_v20 = vpop.f32.mrf.mxu1 }
  0xf2   :  { %v341_v32 = vadd.f32 %v1431_v20, %v1808_v13  ;;  %v392_v46 = vmax.f32 %v330_v42, 0.0  ;;  %v590_v20 = vunpack.c.l.s4 %v1607_v12 }
  0xf3   :  { %v332_v21 = vpop.f32.mrf.mxu1 }
  0xf4   :  { %v395_v38 = vmax.f32 %v341_v32, 0.0  ;;  %v333_v39 = vadd.f32 %v1808_v13, %v332_v21  ;;  %v563_v21 = vsub.s32 %v560_v19, %v562_v5 }
  0xf5   :  { %v1434_v22 = vpop.f32.mrf.mxu1 }
  0xf6   :  { %v354_v23 = vadd.f32 %v1434_v22, %v1808_v13  ;;  %v393_v44 = vmax.f32 %v333_v39, 0.0  ;;  %v1561_v22 = vld [vmem:[%s2101_s7 + $0x10] sm:$0xff]   ;;  %v681_v39 = vld [vmem:[%s2102_s8] sm:$0xff] }
  0xf7   :  { %v345_v7 = vpop.f32.mrf.mxu1 }
  0xf8   :  { %v398_v29 = vmax.f32 %v354_v23, 0.0  ;;  %v346_v30 = vadd.f32 %v1808_v13, %v345_v7 }
  0xf9   :  { %v1435_v14 = vpop.f32.mrf.mxu1 }
  0xfa   :  { %v357_v24 = vadd.f32 %v1435_v14, %v1808_v13  ;;  %v396_v36 = vmax.f32 %v346_v30, 0.0 }
  0xfb   :  { %v348_v25 = vpop.f32.mrf.mxu1 }
  0xfc   :  { %v399_v26 = vmax.f32 %v357_v24, 0.0  ;;  %v349_v27 = vadd.f32 %v1808_v13, %v348_v25  ;;  %v1562_v24 = vld [vmem:[%s2101_s7 + $0x8] sm:$0xff]   ;;  %s1609_s7 = smov 48  }
  0xfd   :  { %v1438_v28 = vpop.f32.mrf.mxu1 }
  0xfe   :  { %1445 = vmatpush3.msra.mxu1 %v399_v26  ;;  %v397_v33 = vmax.f32 %v349_v27, 0.0  ;;  %v370_v57 = vadd.f32 %v1438_v28, %v1808_v13 }
  0xff   :  { %v361_v31 = vpop.f32.mrf.mxu1  ;;  %1446 = vmatprep.subr.mxu1 %v1604_v0 }
 0x100   :  { %1447 = vmatpush3.msra.mxu1 %v398_v29  ;;  %v402_v61 = vmax.f32 %v370_v57, 0.0  ;;  %v362_v62 = vadd.f32 %v1808_v13, %v361_v31  ;;  %v683_v29 = vld [vmem:[%s2102_s8 + $0x10] sm:$0xff] }
 0x101   :  { %v1439_v34 = vpop.f32.mrf.mxu1  ;;  %1448 = vmatprep.subr.mxu1 %v1604_v0 }
 0x102   :  { %1449 = vmatpush3.msra.mxu1 %v397_v33  ;;  %v373_v55 = vadd.f32 %v1439_v34, %v1808_v13  ;;  %v400_v1 = vmax.f32 %v362_v62, 0.0  ;;  %v682_v34 = vld [vmem:[%s2102_s8 + $0x8] sm:$0xff]  ;;  %s1611_s8 = smov 64  }
 0x103   :  { %v364_v37 = vpop.f32.mrf.mxu1  ;;  %1450 = vmatprep.subr.mxu1 %v1604_v0 }
 0x104   :  { %1451 = vmatpush3.msra.mxu1 %v396_v36  ;;  %v403_v59 = vmax.f32 %v373_v55, 0.0  ;;  %v365_v60 = vadd.f32 %v1808_v13, %v364_v37 }
 0x105   :  { %v1442_v40 = vpop.f32.mrf.mxu1  ;;  %1452 = vmatprep.subr.mxu1 %v1604_v0 }
 0x106   :  { %1453 = vmatpush3.msra.mxu1 %v395_v38  ;;  %v386_v47 = vadd.f32 %v1442_v40, %v1808_v13  ;;  %v401_v63 = vmax.f32 %v365_v60, 0.0  ;;  %v680_v40 = vld [vmem:[%s2103_s6] sm:$0x3]  ;;  %s1612_s6 = smov 80  }
 0x107   :  { %v377_v43 = vpop.f32.mrf.mxu1  ;;  %1454 = vmatprep.subr.mxu1 %v1604_v0 }
 0x108   :  { %1455 = vmatpush3.msra.mxu1 %v394_v41  ;;  %v406_v53 = vmax.f32 %v386_v47, 0.0  ;;  %v378_v54 = vadd.f32 %v1808_v13, %v377_v43 }
 0x109   :  { %v1443_v45 = vpop.f32.mrf.mxu1  ;;  %1456 = vmatprep.subr.mxu1 %v1604_v0 }
 0x10a   :  { %v389_v48 = vadd.f32 %v1443_v45, %v1808_v13  ;;  %1457 = vmatpush3.msra.mxu1 %v393_v44  ;;  %v404_v58 = vmax.f32 %v378_v54, 0.0 }
 0x10b   :  { %v380_v50 = vpop.f32.mrf.mxu1  ;;  %1458 = vmatprep.subr.mxu1 %v1604_v0 }
 0x10c   :  { %v407_v51 = vmax.f32 %v389_v48, 0.0  ;;  %v381_v52 = vadd.f32 %v1808_v13, %v380_v50  ;;  %1459 = vmatpush3.msra.mxu1 %v392_v46  ;;  %v591_v13 = vunpack.c.0.s8 %v590_v20 }
 0x10d   :  { %1461 = vmatmul.mubr.msk.f32.vlgmr.msra.gmra.mxu1 %vm410_vm3, %v408_v49  ;;  %1482 = vmatprep.subr.mxu1 %v1604_v0 }
 0x10e   :  { %1464 = vmatpush3.msra.mxu0 %v407_v51  ;;  %1488 = vmatprep.mubr.msk.f32.mxu1 %vm1605_vm0, %v1604_v0  ;;  %v405_v56 = vmax.f32 %v381_v52, 0.0  ;;  %v594_v28 = vsub.s32 %v591_v13, %v562_v5 }
 0x10f   :  { %1465 = vmatprep.subr.mxu0 %v1604_v0  ;;  %1483 = vmatpush3.msra.mxu1 %v683_v29 }
 0x110   :  { %1466 = vmatpush3.msra.mxu0 %v406_v53  ;;  %1484 = vmatprep.subr.mxu1 %v1604_v0 }
 0x111   :  { %1467 = vmatprep.subr.mxu0 %v1604_v0  ;;  %1485 = vmatpush3.msra.mxu1 %v682_v34 }
 0x112   :  { %1468 = vmatpush3.msra.mxu0 %v405_v56  ;;  %1486 = vmatprep.subr.mxu1 %v1604_v0 }
 0x113   :  { %1469 = vmatprep.subr.mxu0 %v1604_v0  ;;  %1487 = vmatpush3.msra.mxu1 %v681_v39 }
 0x114   :  { %1470 = vmatpush3.msra.mxu0 %v404_v58  ;;  %1489 = vmatmul.mubr.msk.f32.vlgmr.msra.gmra.mxu1 %vm684_vm4, %v680_v40 }
 0x115   :  { %1471 = vmatprep.subr.mxu0 %v1604_v0 }
 0x116   :  { %1472 = vmatpush3.msra.mxu0 %v403_v59 }
 0x117   :  { %1473 = vmatprep.subr.mxu0 %v1604_v0 }
 0x118   :  { %1474 = vmatpush3.msra.mxu0 %v402_v61 }
 0x119   :  { %1475 = vmatprep.subr.mxu0 %v1604_v0 }
 0x11a   :  { %1476 = vmatpush3.msra.mxu0 %v401_v63 }
 0x11b   :  { %1477 = vmatprep.subr.mxu0 %v1604_v0 }
 0x11c   :  { %1478 = vmatpush3.msra.mxu0 %v400_v1 }
 0x11d   :  { %1480 = vmatmul.mubr.msk.f32.vlgmr.msra.gmra.mxu0 %vm410_vm3, %v409_v2  ;;  %1491 = vmatprep.subr.bf16.mxu0 %v1604_v0 }
 0x11e   :  { %1507 = vmatprep.mubr.msk.bf16.mxu0 %vm1605_vm0, %v1604_v0  ;;  %1492 = vmatpush3.bf16.msra.mxu0 %v1556_v3  ;;  %v1362_v3 = vld [vmem:[%s2104_s9] ss:$0 sm:$0xff]  ;;  %s1617_s9 = smov 10  }
 0x11f   :  { %1493 = vmatprep.subr.bf16.mxu0 %v1604_v0 }
 0x122   :  { %1494 = vmatpush3.bf16.msra.mxu0 %v1557_v8 }
 0x123   :  { %1495 = vmatprep.subr.bf16.mxu0 %v1604_v0 }
 0x126   :  { %1496 = vmatpush3.bf16.msra.mxu0 %v1558_v9 }
 0x127   :  { %1497 = vmatprep.subr.bf16.mxu0 %v1604_v0 }
 0x12a   :  { %1498 = vmatpush3.bf16.msra.mxu0 %v1559_v10 }
 0x12b   :  { %1499 = vmatprep.subr.bf16.mxu0 %v1604_v0 }
 0x12e   :  { %1500 = vmatpush3.bf16.msra.mxu0 %v1560_v6 }
 0x12f   :  { %1501 = vmatprep.subr.bf16.mxu0 %v1604_v0 }
 0x132   :  { %1502 = vmatpush3.bf16.msra.mxu0 %v1561_v22 }
 0x133   :  { %1503 = vmatprep.subr.bf16.mxu0 %v1604_v0 }
 0x136   :  { %1504 = vmatpush3.bf16.msra.mxu0 %v1562_v24 }
 0x137   :  { %1505 = vmatprep.subr.bf16.mxu0 %v1604_v0 }
 0x13a   :  { %1506 = vmatpush3.bf16.msra.mxu0 %v1563_v35 }
 0x1cd   :  { %v480_v11 = vpop.f32.mrf.mxu1 }
 0x1ce   :  { %v557_v7 = vcombine.high %v480_v11, %v1604_v0  ;;  %v564_v14 = vrot.slane %v480_v11, %v563_v21 }
 0x1cf   :  { %v1462_v15 = vpop.f32.mrf.mxu1 }
 0x1d0   :  { %v571_v25 = vrot.slane %v557_v7, %v563_v21 }
 0x1d4   :  { %v754_v63 = vpop.f32.mrf.mxu1 }
 0x1d6   :  { %v1490_v1 = vpop.f32.mrf.mxu1 }
 0x1dd   :  { %v553_v23 = vpop.f32.mrf.mxu0 }
 0x1de   :  { %v572_v26 = vcombine.high %v553_v23, %v1604_v0  ;;  %v579_v27 = vrot.slane %v553_v23, %v563_v21 }
 0x1df   :  { %v1481_v30 = vpop.f32.mrf.mxu0 }
 0x1e0   :  { %v586_v31 = vrot.slane %v572_v26, %v563_v21  ;;  %v587_v32 = vcombine.low %v564_v14, %v579_v27  ;;  %v588_v33 = vcombine.high %v564_v14, %v579_v27 }
 0x1e2   :  { %v595_v36 = vrot.slane %v587_v32, %v594_v28  ;;  %v603_v37 = vcombine.low %v571_v25, %v586_v31  ;;  %v602_v38 = vrot.slane %v588_v33, %v594_v28  ;;  %v604_v42 = vcombine.high %v571_v25, %v586_v31 }
 0x1e4   :  { %628 = vrot.lane.b32.xlu0 %v602_v38, %s1608_s22  ;;  %v620_v41 = vcombine.high %v602_v38, %v1604_v0  ;;  %v619_v43 = vcombine.high %v595_v36, %v1604_v0  ;;  %v611_v44 = vrot.slane %v603_v37, %v594_v28  ;;  %v618_v46 = vrot.slane %v604_v42, %v594_v28 }
 0x1e6   :  { %632 = vrot.lane.b32.xlu1 %v620_v41, %s1609_s7  ;;  %v621_v45 = vcombine.high %v611_v44, %v1604_v0  ;;  %v622_v47 = vcombine.high %v618_v46, %v1604_v0 }
 0x1e8   :  { %624 = vrot.lane.b32.xlu0 %v619_v43, %s1610_s23 }
 0x1ea   :  { %636 = vrot.lane.b32.xlu1 %v611_v44, %s1611_s8 }
 0x1ec   :  { %640 = vrot.lane.b32.xlu0 %v621_v45, %s1612_s6 }
 0x1ee   :  { %644 = vrot.lane.b32.xlu1 %v618_v46, %s1613_s24 }
 0x1f0   :  { %648 = vrot.lane.b32.xlu0 %v622_v47, %s1614_s25 }
 0x256   :  { %v629_v48 = vpop.permute.xlu0 %628 }
 0x258   :  { %v633_v49 = vpop.permute.xlu1 %632 }
 0x25a   :  { %v625_v50 = vpop.permute.xlu0 %624 }
 0x25b   :  { %v652_v51 = vsel %vm651_vm5, %v595_v36, %v625_v50 }
 0x25c   :  { %v653_v52 = vsel %vm68_vm1, %v652_v51, %v629_v48  ;;  %v637_v53 = vpop.permute.xlu1 %636 }
 0x25d   :  { %v655_v54 = vsel %vm654_vm6, %v653_v52, %v633_v49 }
 0x25e   :  { %v656_v55 = vsel %vm410_vm3, %v655_v54, %v637_v53  ;;  %v641_v56 = vpop.permute.xlu0 %640 }
 0x25f   :  { %v658_v57 = vsel %vm657_vm7, %v656_v55, %v641_v56 }
 0x260   :  { %v645_v58 = vpop.permute.xlu1 %644 }
 0x261   :  { %v660_v59 = vsel %vm659_vm8, %v658_v57, %v645_v58 }
 0x262   :  { %v649_v60 = vpop.permute.xlu0 %648 }
 0x263   :  { %v662_v61 = vsel %vm661_vm9, %v660_v59, %v649_v60 }
 0x264   :  { %v663_v62 = vpack.c.bf16 %v662_v61, %v662_v61 }
 0x266   :  { %1508 = vmatmul.mubr.bf16.vlgmr.msra.gmra.mxu0 %v663_v62 }
 0x326   :  { %v840_v2 = vpop.f32.mrf.mxu0 }
 0x327   :  { %v841_v8 = vadd.f32 %v840_v2, %v754_v63 }
 0x328   :  { %v1509_v9 = vpop.f32.mrf.mxu0 }
 0x329   :  { %v1910_v10 = vadd.f32 %v1362_v3, %v841_v8 }
 0x32a   :  { %v843_v11 = vpop.f32.mrf.mxu0 }
 0x32b   :  { %v854_v15 = vmul.f32 %v1910_v10, %v1910_v10 }
 0x32c   :  { %v1510_v16 = vpop.f32.mrf.mxu0 }
 0x32d   :  { %860 = vrot.lane.b32.xlu0 %v854_v15, %s1615_s27  ;;  %856 = vrot.lane.b32.xlu1 %v854_v15, %s1616_s28 }
 0x39f   :  { %v857_v17 = vpop.permute.xlu1 %856  ;;  %v861_v19 = vpop.permute.xlu0 %860 }
 0x3a0   :  { %v859_v18 = vadd.f32 %v857_v17, %v854_v15 }
 0x3a2   :  { %v863_v5 = vadd.f32 %v861_v19, %v859_v18 }
 0x3a4   :  { %1572 = vrsqrt.f32 %v863_v5  ;;  %vm866_vm10 = vcmp.eq.f32.partialorder %v863_v5, inf  ;;  %v869_v20 = vand.u32 2147483648, %v863_v5  ;;  %vm868_vm11 = vcmp.eq.f32.partialorder %v863_v5, 0.0 }
 0x3b1   :  { %v1573_v6 = vpop.eup %1572 }
 0x3b2   :  { %v865_v12 = vmul.f32 %v1573_v6, %v863_v5 }
 0x3b4   :  { %v867_v21 = vsel %vm866_vm10, %v863_v5, %v865_v12 }
 0x3b5   :  { %v870_v22 = vsel %vm868_vm11, %v869_v20, %v867_v21 }
 0x3b6   :  { %v871_v7 = vmax.f32 %v870_v22, 1e-12 }
 0x3b8   :  { %1574 = vrcp.f32 %v871_v7 }
 0x3c5   :  { %v1575_v13 = vpop.eup %1574 }
 0x3c6   :  { %879 = vrot.lane.b32.xlu0 %v1575_v13, %s1617_s9  ;;  %875 = vrot.lane.b32.xlu1 %v1575_v13, %s1618_s29  ;;  %v1935_v29 = vmul.f32 %v1575_v13, %v1910_v10 }
 0x3ca   :  { %884 = vrot.lane.b32.xlu1 %v1910_v10, %s1619_s30 }
 0x438   :  { %v880_v14 = vpop.permute.xlu0 %879  ;;  %v876_v23 = vpop.permute.xlu1 %875 }
 0x439   :  { %v1921_v24 = vmul.f32 %v880_v14, %v1910_v10  ;;  %v1924_v25 = vmul.f32 %v876_v23, %v1910_v10 }
 0x43c   :  { %v885_v26 = vpop.permute.xlu1 %884 }
 0x43d   :  { %v888_v27 = vmul.f32 %v885_v26, %v1924_v25  ;;  %v894_v28 = vmul.f32 %v885_v26, %v1921_v24  ;;  %v887_v30 = vmul.f32 %v885_v26, %v1935_v29 }
 0x43f   :  { %896 = vrot.lane.b32.xlu1 %v894_v28, %s1615_s27  ;;  %890 = vrot.lane.b32.xlu0 %v888_v27, %s1616_s28  ;;  %v1000_v28 = vadd.f32 1.0, %v1935_v29 }
 0x443   :  { %917 = vrot.lane.b32.xlu1 %v1921_v24, %s1615_s27  ;;  %907 = vrot.lane.b32.xlu0 %v1924_v25, %s1616_s28 }
 0x4b1   :  { %v897_v31 = vpop.permute.xlu1 %896  ;;  %v891_v32 = vpop.permute.xlu0 %890 }
 0x4b2   :  { %v893_v33 = vadd.f32 %v891_v32, %v887_v30  ;;  %v1025_v30 = vsub.f32 1.0, %v1935_v29 }
 0x4b4   :  { %v899_v34 = vadd.f32 %v897_v31, %v893_v33 }
 0x4b5   :  { %v918_v35 = vpop.permute.xlu1 %917  ;;  %v908_v36 = vpop.permute.xlu0 %907 }
 0x4b6   :  { %v920_v37 = vmul.f32 %v918_v35, %v899_v34  ;;  %v910_v38 = vmul.f32 %v908_v36, %v899_v34  ;;  %v900_v39 = vmul.f32 %v899_v34, %v1935_v29 }
 0x4b8   :  { %922 = vrot.lane.b32.xlu1 %v920_v37, %s1620_s11  ;;  %912 = vrot.lane.b32.xlu0 %v910_v38, %s1621_s12 }
 0x4bc   :  { %902 = vrot.lane.b32.xlu0 %v900_v39, %s1622_s13 }
 0x52a   :  { %v923_v40 = vpop.permute.xlu1 %922  ;;  %v913_v41 = vpop.permute.xlu0 %912 }
 0x52b   :  { %v925_v42 = vsub.f32 %v1910_v10, %v923_v40  ;;  %v915_v43 = vsub.f32 %v1910_v10, %v913_v41 }
 0x52d   :  { %v933_v44 = vmul.f32 %v925_v42, %v925_v42  ;;  %v927_v45 = vmul.f32 %v915_v43, %v915_v43 }
 0x52e   :  { %v903_v46 = vpop.permute.xlu0 %902 }
 0x52f   :  { %929 = vrot.lane.b32.xlu1 %v927_v45, %s1616_s28  ;;  %935 = vrot.lane.b32.xlu0 %v933_v44, %s1615_s27  ;;  %v905_v47 = vsub.f32 %v1910_v10, %v903_v46 }
 0x531   :  { %v926_v48 = vmul.f32 %v905_v47, %v905_v47 }
 0x5a1   :  { %v930_v49 = vpop.permute.xlu1 %929  ;;  %v936_v51 = vpop.permute.xlu0 %935 }
 0x5a2   :  { %v932_v50 = vadd.f32 %v930_v49, %v926_v48 }
 0x5a4   :  { %v938_v52 = vadd.f32 %v936_v51, %v932_v50 }
 0x5a6   :  { %1576 = vrsqrt.f32 %v938_v52  ;;  %vm941_vm12 = vcmp.eq.f32.partialorder %v938_v52, inf  ;;  %v944_v55 = vand.u32 2147483648, %v938_v52  ;;  %vm943_vm13 = vcmp.eq.f32.partialorder %v938_v52, 0.0 }
 0x5b3   :  { %v1577_v53 = vpop.eup %1576 }
 0x5b4   :  { %v940_v54 = vmul.f32 %v1577_v53, %v938_v52 }
 0x5b6   :  { %v942_v56 = vsel %vm941_vm12, %v938_v52, %v940_v54 }
 0x5b7   :  { %v945_v57 = vsel %vm943_vm13, %v944_v55, %v942_v56 }
 0x5b8   :  { %v946_v58 = vmax.f32 %v945_v57, 1e-12 }
 0x5ba   :  { %1578 = vrcp.f32 %v946_v58 }
 0x5c7   :  { %v1579_v59 = vpop.eup %1578 }
 0x5c8   :  { %954 = vrot.lane.b32.xlu0 %v1579_v59, %s1617_s9  ;;  %950 = vrot.lane.b32.xlu1 %v1579_v59, %s1618_s29  ;;  %v948_v1 = vmul.f32 %v1579_v59, %v905_v47 }
 0x63a   :  { %v955_v60 = vpop.permute.xlu0 %954  ;;  %v951_v61 = vpop.permute.xlu1 %950 }
 0x63b   :  { %v957_v62 = vmul.f32 %v955_v60, %v925_v42  ;;  %v953_v63 = vmul.f32 %v951_v61, %v915_v43 }
 0x63d   :  { %978 = vrot.lane.b32.xlu0 %v957_v62, %s1623_s14  ;;  %964 = vrot.lane.b32.xlu1 %v953_v63, %s1615_s27 }
 0x641   :  { %959 = vrot.lane.b32.xlu1 %v957_v62, %s1624_s3 }
 0x645   :  { %991 = vrot.lane.b32.xlu1 %v948_v1, %s1615_s27 }
 0x649   :  { %1069 = vrot.lane.b32.xlu1 %v1924_v25, %s1617_s9 }
 0x6af   :  { %v979_v2 = vpop.permute.xlu0 %978  ;;  %v965_v3 = vpop.permute.xlu1 %964 }
 0x6b0   :  { %v981_v8 = vmul.f32 %v979_v2, %v1935_v29  ;;  %v967_v9 = vmul.f32 %v965_v3, %v1921_v24 }
 0x6b2   :  { %969 = vrot.lane.b32.xlu0 %v967_v9, %s1616_s28  ;;  %983 = vrot.lane.b32.xlu1 %v981_v8, %s1617_s9 }
 0x6b3   :  { %v960_v10 = vpop.permute.xlu1 %959 }
 0x6b4   :  { %v962_v17 = vmul.f32 %v960_v10, %v1924_v25 }
 0x6b6   :  { %974 = vrot.lane.b32.xlu0 %v948_v1, %s1616_s28 }
 0x6b7   :  { %v992_v11 = vpop.permute.xlu1 %991 }
 0x6b8   :  { %v994_v6 = vmul.f32 %v992_v11, %v1924_v25 }
 0x6ba   :  { %1060 = vrot.lane.b32.xlu0 %v957_v62, %s1619_s30 }
 0x6bb   :  { %v1070_v15 = vpop.permute.xlu1 %1069 }
 0x6bc   :  { %v1089_v16 = vadd.f32 %v1070_v15, %v948_v1  ;;  %v1072_v32 = vsub.f32 %v948_v1, %v1070_v15 }
 0x6be   :  { %1090 = vrot.lane.b32.xlu0 %v1921_v24, %s1616_s28 }
 0x6c2   :  { %987 = vrot.lane.b32.xlu0 %v953_v63, %s1624_s3 }
 0x6c6   :  { %1095 = vrot.lane.b32.xlu0 %v1089_v16, %s1619_s30 }
 0x724   :  { %v970_v18 = vpop.permute.xlu0 %969  ;;  %v984_v20 = vpop.permute.xlu1 %983 }
 0x725   :  { %v972_v19 = vsub.f32 %v962_v17, %v970_v18 }
 0x727   :  { %1065 = vrot.lane.b32.xlu1 %v972_v19, %s1618_s29 }
 0x728   :  { %v975_v5 = vpop.permute.xlu0 %974 }
 0x729   :  { %v977_v12 = vmul.f32 %v975_v5, %v1921_v24 }
 0x72b   :  { %v986_v21 = vsub.f32 %v977_v12, %v984_v20  ;;  %996 = vrot.lane.b32.xlu1 %v994_v6, %s1616_s28 }
 0x72c   :  { %v1061_v22 = vpop.permute.xlu0 %1060 }
 0x72d   :  { %v1106_v7 = vadd.f32 %v1061_v22, %v986_v21  ;;  %v1063_v14 = vsub.f32 %v986_v21, %v1061_v22 }
 0x72f   :  { %1108 = vrot.lane.b32.xlu0 %v1106_v7, %s1615_s27 }
 0x730   :  { %v1091_v13 = vpop.permute.xlu0 %1090 }
 0x731   :  { %v1093_v23 = vadd.f32 %v1091_v13, %v972_v19 }
 0x733   :  { %1099 = vrot.lane.b32.xlu1 %v1093_v23, %s1616_s28  ;;  %1083 = vrot.lane.b32.xlu0 %v1063_v14, %s1615_s27 }
 0x734   :  { %v988_v26 = vpop.permute.xlu0 %987 }
 0x735   :  { %v990_v31 = vmul.f32 %v988_v26, %v1935_v29  ;;  %v1001_v33 = vadd.f32 %v1000_v28, %v988_v26  ;;  %v1013_v35 = vsub.f32 %v1000_v28, %v988_v26  ;;  %v1026_v36 = vadd.f32 %v1025_v30, %v988_v26 }
 0x736   :  { %v1038_v37 = vsub.f32 %v1025_v30, %v988_v26 }
 0x738   :  { %v1096_v19 = vpop.permute.xlu0 %1095 }
 0x799   :  { %v1066_v27 = vpop.permute.xlu1 %1065 }
 0x79a   :  { %v1068_v25 = vsub.f32 %v1921_v24, %v1066_v27 }
 0x79c   :  { %1074 = vrot.lane.b32.xlu1 %v1068_v25, %s1615_s27 }
 0x79d   :  { %v997_v34 = vpop.permute.xlu1 %996 }
 0x79e   :  { %v999_v38 = vsub.f32 %v990_v31, %v997_v34 }
 0x7a0   :  { %v1002_v39 = vadd.f32 %v1001_v33, %v999_v38  ;;  %v1014_v40 = vsub.f32 %v1013_v35, %v999_v38  ;;  %v1027_v41 = vsub.f32 %v1026_v36, %v999_v38  ;;  %v1039_v42 = vadd.f32 %v1038_v37, %v999_v38  ;;  %1078 = vrot.lane.b32.xlu1 %v1072_v32, %s1619_s30 }
 0x7a1   :  { %v1109_v6 = vpop.permute.xlu0 %1108 }
 0x7a2   :  { %v1004_v24 = vmax.f32 %v1002_v39, 0.0  ;;  %v1016_v43 = vmax.f32 %v1014_v40, 0.0  ;;  %v1029_v44 = vmax.f32 %v1027_v41, 0.0  ;;  %v1041_v45 = vmax.f32 %v1039_v42, 0.0 }
 0x7a3   :  { %vm1003_vm14 = vcmp.gt.f32.partialorder %v1002_v39, 0.0  ;;  %vm1015_vm0 = vcmp.gt.f32.partialorder %v1014_v40, 0.0  ;;  %vm1028_vm1 = vcmp.gt.f32.partialorder %v1027_v41, 0.0  ;;  %vm1040_vm9 = vcmp.gt.f32.partialorder %v1039_v42, 0.0 }
 0x7a4   :  { %1580 = vrsqrt.f32 %v1004_v24  ;;  %vm1007_vm15 = vcmp.eq.f32.partialorder %v1004_v24, inf  ;;  %vm1009_vm2 = vcmp.eq.f32.partialorder %v1004_v24, 0.0  ;;  %v1010_v48 = vand.u32 2147483648, %v1004_v24 }
 0x7a5   :  { %1582 = vrsqrt.f32 %v1016_v43  ;;  %vm1019_vm3 = vcmp.eq.f32.partialorder %v1016_v43, inf  ;;  %vm1021_vm4 = vcmp.eq.f32.partialorder %v1016_v43, 0.0  ;;  %v1022_v51 = vand.u32 2147483648, %v1016_v43  ;;  %v1100_v20 = vpop.permute.xlu1 %1099  ;;  %v1084_v14 = vpop.permute.xlu0 %1083 }
 0x7a6   :  { %1584 = vrsqrt.f32 %v1029_v44  ;;  %vm1032_vm5 = vcmp.eq.f32.partialorder %v1029_v44, inf  ;;  %vm1034_vm6 = vcmp.eq.f32.partialorder %v1029_v44, 0.0  ;;  %v1035_v55 = vand.u32 2147483648, %v1029_v44 }
 0x7a7   :  { %1586 = vrsqrt.f32 %v1041_v45  ;;  %vm1044_vm7 = vcmp.eq.f32.partialorder %v1041_v45, inf  ;;  %v1047_v62 = vand.u32 2147483648, %v1041_v45  ;;  %vm1046_vm8 = vcmp.eq.f32.partialorder %v1041_v45, 0.0 }
 0x7b1   :  { %v1581_v29 = vpop.eup %1580 }
 0x7b2   :  { %v1583_v46 = vpop.eup %1582  ;;  %v1006_v47 = vmul.f32 %v1581_v29, %v1004_v24 }
 0x7b3   :  { %v1585_v49 = vpop.eup %1584  ;;  %v1018_v50 = vmul.f32 %v1583_v46, %v1016_v43 }
 0x7b4   :  { %v1587_v52 = vpop.eup %1586  ;;  %v1008_v53 = vsel %vm1007_vm15, %v1004_v24, %v1006_v47  ;;  %v1031_v54 = vmul.f32 %v1585_v49, %v1029_v44 }
 0x7b5   :  { %v1011_v56 = vsel %vm1009_vm2, %v1010_v48, %v1008_v53  ;;  %v1020_v57 = vsel %vm1019_vm3, %v1016_v43, %v1018_v50  ;;  %v1043_v58 = vmul.f32 %v1587_v52, %v1041_v45 }
 0x7b6   :  { %v1974_v59 = vsel %vm1003_vm14, %v1011_v56, 0.0  ;;  %v1023_v60 = vsel %vm1021_vm4, %v1022_v51, %v1020_v57  ;;  %v1033_v61 = vsel %vm1032_vm5, %v1029_v44, %v1031_v54 }
 0x7b7   :  { %v1024_v63 = vsel %vm1015_vm0, %v1023_v60, 0.0  ;;  %v1036_v1 = vsel %vm1034_vm6, %v1035_v55, %v1033_v61  ;;  %v1045_v2 = vsel %vm1044_vm7, %v1041_v45, %v1043_v58  ;;  %v1059_v41 = vmul.f32 %v1974_v59, %v1974_v59 }
 0x7b8   :  { %v1037_v3 = vsel %vm1028_vm1, %v1036_v1, 0.0  ;;  %v1048_v8 = vsel %vm1046_vm8, %v1047_v62, %v1045_v2  ;;  %vm1050_vm10 = vcmp.ge.f32.partialorder %v1974_v59, %v1024_v63  ;;  %v1088_v12 = vmul.f32 %v1024_v63, %v1024_v63 }
 0x7b9   :  { %v1049_v9 = vsel %vm1040_vm9, %v1048_v8, 0.0  ;;  %vm1051_vm11 = vcmp.ge.f32.partialorder %v1974_v59, %v1037_v3  ;;  %vm1055_vm12 = vcmp.ge.f32.partialorder %v1024_v63, %v1037_v3  ;;  %v1105_v5 = vmul.f32 %v1037_v3, %v1037_v3 }
 0x7ba   :  { %vm1980_vm13 = vcmp.ge.f32.partialorder %v1037_v3, %v1049_v9  ;;  %vm1052_vm14 = vmand %vm1050_vm10, %vm1051_vm11  ;;  %vm1053_vm15 = vcmp.ge.f32.partialorder %v1974_v59, %v1049_v9  ;;  %vm1056_vm0 = vcmp.ge.f32.partialorder %v1024_v63, %v1049_v9  ;;  %v1114_v7 = vmul.f32 %v1049_v9, %v1049_v9 }
 0x7bb   :  { %v1118_v11 = vsel %vm1980_vm13, %v1037_v3, %v1049_v9  ;;  %vm1987_vm1 = vmand %vm1052_vm14, %vm1053_vm15  ;;  %v1102_v21 = vsel %vm1980_vm13, %v1096_v19, %v1100_v20  ;;  %v1111_v22 = vsel %vm1980_vm13, %v1105_v5, %v1109_v6 }
 0x7bc   :  { %vm1991_vm2 = vmand %vm1055_vm12, %vm1056_vm0  ;;  %v1115_v27 = vsel %vm1980_vm13, %v1109_v6, %v1114_v7 }
 0x7bd   :  { %v1997_v17 = vsel %vm1991_vm2, %v1024_v63, %v1118_v11  ;;  %v1103_v13 = vsel %vm1991_vm2, %v1088_v12, %v1102_v21  ;;  %v1112_v23 = vsel %vm1991_vm2, %v1096_v19, %v1111_v22  ;;  %v1116_v31 = vsel %vm1991_vm2, %v1100_v20, %v1115_v27 }
 0x7be   :  { %v1120_v18 = vsel %vm1987_vm1, %v1974_v59, %v1997_v17  ;;  %v2015_v25 = vsel %vm1987_vm1, %v1084_v14, %v1103_v13  ;;  %v1625_v21 = vmov 0.7853982  }
 0x7bf   :  { %v1123_v32 = vmul.f32 %v2015_v25, %v2015_v25 }
 0x80e   :  { %v1075_v26 = vpop.permute.xlu1 %1074 }
 0x80f   :  { %v2019_v28 = vsel %vm1987_vm1, %v1075_v26, %v1112_v23 }
 0x810   :  { %v1124_v30 = vmul.f32 %v2019_v28, %v2019_v28 }
 0x812   :  { %v1079_v33 = vpop.permute.xlu1 %1078  ;;  %v1125_v35 = vadd.f32 %v1124_v30, %v1123_v32 }
 0x813   :  { %v2029_v34 = vsel %vm1987_vm1, %v1079_v33, %v1116_v31  ;;  %v1081_v38 = vsel %vm1980_vm13, %v1075_v26, %v1079_v33 }
 0x814   :  { %v1126_v36 = vmul.f32 %v2029_v34, %v2029_v34  ;;  %v1086_v39 = vsel %vm1991_vm2, %v1084_v14, %v1081_v38 }
 0x815   :  { %v1087_v24 = vsel %vm1987_vm1, %v1059_v41, %v1086_v39  ;;  %vm1315_vm1 = vcmask 97280  }
 0x816   :  { %v1127_v37 = vadd.f32 %v1126_v36, %v1125_v35  ;;  %v1135_v29 = vand.u32 2147483647, %v1087_v24  ;;  %vm1165_vm6 = vcmp.lt.s32.totalorder %v1087_v24, 0  ;;  %vm1162_vm8 = vcmp.lt.f32.partialorder %v1087_v24, 0.0 }
 0x817   :  { %v1166_v6 = vsel %vm1165_vm6, 3.1415927, %v1604_v0  ;;  %vm1169_vm11 = vcmp.ne.f32.partialorder %v1087_v24, %v1087_v24  ;;  %v1174_v22 = vsel %vm1162_vm8, 2.3561945, %v1625_v21  ;;  %v1626_v24 = vmov 683565275  }
 0x818   :  { %1588 = vrsqrt.f32 %v1127_v37  ;;  %vm1130_vm3 = vcmp.eq.f32.partialorder %v1127_v37, inf  ;;  %v1133_v43 = vand.u32 2147483648, %v1127_v37  ;;  %vm1132_vm4 = vcmp.eq.f32.partialorder %v1127_v37, 0.0 }
 0x819   :  { %vm1175_vm13 = vcmp.eq.s32.totalorder %v1135_v29, inf }
 0x825   :  { %v1589_v40 = vpop.eup %1588 }
 0x826   :  { %v1129_v42 = vmul.f32 %v1589_v40, %v1127_v37 }
 0x828   :  { %v1131_v44 = vsel %vm1130_vm3, %v1127_v37, %v1129_v42 }
 0x829   :  { %v1134_v45 = vsel %vm1132_vm4, %v1133_v43, %v1131_v44  ;;  %v1627_v44 = vmov 2475754826  }
 0x82a   :  { %v1136_v46 = vand.u32 2147483647, %v1134_v45  ;;  %vm1170_vm7 = vcmp.ne.f32.partialorder %v1134_v45, %v1134_v45  ;;  %vm1167_vm10 = vcmp.eq.f32.partialorder %v1134_v45, 0.0  ;;  %v1180_v14 = vand.u32 2147483648, %v1134_v45 }
 0x82b   :  { %vm1171_vm12 = vmor %vm1169_vm11, %vm1170_vm7 }
 0x82c   :  { %v1138_v47 = vmax.f32 %v1135_v29, %v1136_v46  ;;  %v1137_v48 = vmin.f32 %v1135_v29, %v1136_v46  ;;  %vm1159_vm5 = vcmp.gt.f32.partialorder %v1136_v46, %v1135_v29  ;;  %vm1176_vm9 = vcmp.eq.s32.totalorder %v1136_v46, inf }
 0x82d   :  { %vm1177_vm14 = vmand %vm1175_vm13, %vm1176_vm9  ;;  %v1628_v46 = vmov 2131351028  }
 0x82e   :  { %1590 = vrcp.f32 %v1138_v47 }
 0x83b   :  { %v1591_v49 = vpop.eup %1590 }
 0x83c   :  { %v1140_v50 = vmul.f32 %v1591_v49, %v1137_v48  ;;  %v1629_v49 = vmov 2102212464  }
 0x83e   :  { %v1141_v51 = vmul.f32 %v1140_v50, %v1140_v50 }
 0x840   :  { %v1142_v52 = vmul.f32 0.002785687, %v1141_v51 }
 0x842   :  { %v1143_v53 = vadd.f32 -0.015866, %v1142_v52  ;;  %v1630_v52 = vmov 920167782  }
 0x844   :  { %v1144_v54 = vmul.f32 %v1143_v53, %v1141_v51 }
 0x846   :  { %v1145_v55 = vadd.f32 0.04247222, %v1144_v54 }
 0x848   :  { %v1146_v56 = vmul.f32 %v1145_v55, %v1141_v51  ;;  %v1631_v55 = vmov 1326507024  }
 0x84a   :  { %v1147_v57 = vadd.f32 -0.074975304, %v1146_v56 }
 0x84c   :  { %v1148_v58 = vmul.f32 %v1147_v57, %v1141_v51 }
 0x84e   :  { %v1149_v60 = vadd.f32 0.1064488, %v1148_v58 }
 0x850   :  { %v1150_v61 = vmul.f32 %v1149_v60, %v1141_v51 }
 0x852   :  { %v1151_v62 = vadd.f32 -0.14207031, %v1150_v61 }
 0x854   :  { %v1152_v63 = vmul.f32 %v1151_v62, %v1141_v51 }
 0x856   :  { %v1153_v1 = vadd.f32 0.19993454, %v1152_v63 }
 0x858   :  { %v1154_v2 = vmul.f32 %v1153_v1, %v1141_v51 }
 0x85a   :  { %v1155_v3 = vadd.f32 -0.33333147, %v1154_v2 }
 0x85c   :  { %v1156_v8 = vmul.f32 %v1155_v3, %v1141_v51 }
 0x85e   :  { %v1157_v9 = vmul.f32 %v1156_v8, %v1140_v50 }
 0x860   :  { %v1158_v10 = vadd.f32 %v1157_v9, %v1140_v50 }
 0x862   :  { %v1160_v11 = vsub.f32 1.5707964, %v1158_v10 }
 0x864   :  { %v1161_v16 = vsel %vm1159_vm5, %v1160_v11, %v1158_v10 }
 0x865   :  { %v1163_v19 = vsub.f32 3.1415927, %v1161_v16 }
 0x867   :  { %v1164_v5 = vsel %vm1162_vm8, %v1163_v19, %v1161_v16 }
 0x868   :  { %v1168_v12 = vsel %vm1167_vm10, %v1166_v6, %v1164_v5 }
 0x869   :  { %v1172_v20 = vsel %vm1171_vm12, nan, %v1168_v12 }
 0x86a   :  { %v1178_v7 = vsel %vm1177_vm14, %v1174_v22, %v1172_v20  ;;  %vm1317_vm14 = vcmask 105472  }
 0x86b   :  { %v1179_v13 = vand.u32 2147483647, %v1178_v7 }
 0x86d   :  { %v1181_v23 = vor.u32 %v1180_v14, %v1179_v13 }
 0x86f   :  { %v2042_v26 = vmul.f32 2.0, %v1181_v23 }
 0x871   :  { %v1183_v27 = vand.u32 2147483647, %v2042_v26 }
 0x873   :  { %vm2045_vm15 = vcmp.lt.f32.partialorder %v1183_v27, 1e-06 }
 0x874   :  { %v2052_v0 = vsel %vm2045_vm15, 1.0, %v2042_v26 }
 0x875   :  { %v2055_v31 = vmul.f32 0.5, %v2052_v0 }
 0x877   :  { %v1194_v32 = vand.u32 2139095040, %v2055_v31  ;;  %v1191_v37 = vand.u32 2147483647, %v2055_v31  ;;  %vm1193_vm8 = vcmp.lt.s32.totalorder %v2055_v31, 0  ;;  %vm1283_vm13 = vweird.f32 %v2055_v31 }
 0x879   :  { %v1195_v33 = vshrl.u32 %v1194_v32, 23  ;;  %v1198_v40 = vand.u32 8388607, %v1191_v37  ;;  %vm1192_vm9 = vcmp.le.f32.partialorder %v1191_v37, 0.7853982 }
 0x87b   :  { %v1363_v35 = vadd.s32 4294967169, %v1195_v33  ;;  %v1199_v57 = vor.u32 8388608, %v1198_v40 }
 0x87d   :  { %v1201_v36 = vadd.s32 1, %v1363_v35  ;;  %v1239_v19 = vshll.u32 %v1199_v57, 8 }
 0x87f   :  { %vm1202_vm0 = vcmp.gt.s32.totalorder %v1201_v36, 0 }
 0x880   :  { %v1203_v38 = vsel %vm1202_vm0, %v1201_v36, 0  ;;  %vm1321_vm0 = vcmask 187392  }
 0x881   :  { %v1205_v39 = vand.u32 31, %v1203_v38  ;;  %v1204_v42 = vshrl.u32 %v1203_v38, 5 }
 0x883   :  { %v1206_v41 = vsub.s32 32, %v1205_v39  ;;  %v1208_v43 = vshll.u32 %v1626_v24, %v1205_v39  ;;  %v1211_v45 = vshll.u32 %v1627_v44, %v1205_v39  ;;  %v1214_v48 = vshll.u32 %v1628_v46, %v1205_v39 }
 0x884   :  { %v1217_v51 = vshll.u32 %v1629_v49, %v1205_v39  ;;  %v1220_v54 = vshll.u32 %v1630_v52, %v1205_v39  ;;  %vm1223_vm2 = vcmp.lt.s32.totalorder %v1204_v42, 1  ;;  %vm1226_vm3 = vcmp.lt.s32.totalorder %v1204_v42, 4 }
 0x885   :  { %v1209_v29 = vshrl.u32 %v1627_v44, %v1206_v41  ;;  %v1212_v47 = vshrl.u32 %v1628_v46, %v1206_v41  ;;  %v1215_v50 = vshrl.u32 %v1629_v49, %v1206_v41  ;;  %v1218_v53 = vshrl.u32 %v1630_v52, %v1206_v41 }
 0x886   :  { %v1221_v56 = vshrl.u32 %v1631_v55, %v1206_v41  ;;  %v1207_v8 = vshrl.u32 %v1626_v24, %v1206_v41  ;;  %vm1225_vm4 = vcmp.lt.s32.totalorder %v1204_v42, 3  ;;  %vm1224_vm5 = vcmp.lt.s32.totalorder %v1204_v42, 2 }
 0x887   :  { %v1210_v58 = vor.u32 %v1209_v29, %v1208_v43  ;;  %v1213_v60 = vor.u32 %v1212_v47, %v1211_v45  ;;  %v1216_v61 = vor.u32 %v1215_v50, %v1214_v48  ;;  %v1219_v62 = vor.u32 %v1218_v53, %v1217_v51 }
 0x888   :  { %v1222_v63 = vor.u32 %v1221_v56, %v1220_v54 }
 0x889   :  { %v1228_v1 = vsel %vm1226_vm3, %v1216_v61, 2102212464  ;;  %v1231_v2 = vsel %vm1223_vm2, %v1210_v58, %v1213_v60  ;;  %v1235_v3 = vsel %vm1223_vm2, %v1213_v60, %v1216_v61  ;;  %v1232_v9 = vsel %vm1226_vm3, %v1219_v62, 920167782 }
 0x88a   :  { %v1236_v10 = vsel %vm1226_vm3, %v1222_v63, 1326507024  ;;  %v1233_v11 = vsel %vm1225_vm4, %v1216_v61, %v1232_v9  ;;  %v1227_v5 = vsel %vm1223_vm2, %v1207_v8, %v1210_v58  ;;  %v1229_v6 = vsel %vm1225_vm4, %v1213_v60, %v1228_v1 }
 0x88b   :  { %v1237_v16 = vsel %vm1225_vm4, %v1219_v62, %v1236_v10  ;;  %v1234_v12 = vsel %vm1224_vm5, %v1231_v2, %v1233_v11  ;;  %v1230_v14 = vsel %vm1224_vm5, %v1227_v5, %v1229_v6  ;;  %v1186_v1 = vmul.f32 %v2042_v26, %v2042_v26 }
 0x88c   :  { %v1238_v20 = vsel %vm1224_vm5, %v1235_v3, %v1237_v16  ;;  %v2064_v7 = vmul.u32.u64.low %v1239_v19, %v1234_v12  ;;  %v2065_v13 = vmul.u32.u64.high %v1239_v19, %v1234_v12, %v2064_v7  ;;  %v1246_v27 = vmul.u32 %v1239_v19, %v1230_v14 }
 0x88d   :  { %v2061_v21 = vmul.u32.u64.low %v1239_v19, %v1238_v20  ;;  %v2062_v22 = vmul.u32.u64.high %v1239_v19, %v1238_v20, %v2061_v21  ;;  %v1188_v37 = vmul.f32 0.020833334, %v1186_v1  ;;  %v1121_v11 = vmax.f32 %v1120_v18, 0.1  ;;  %v1330_v18 = vld [vmem:[%s2105_s4] ss:$0 sm:$0xff] }
 0x88e   :  { %v1249_v23 = vadd.s32 1, %v2065_v13  ;;  %v198_v30 = vadd.f32 %v1330_v18, %v1803_v4  ;;  %vm1323_vm2 = vcmask 228352  }
 0x88f   :  { %vm1248_vm6 = vc.u32 %v2062_v22, %v2064_v7  ;;  %v1247_v44 = vadd.s32 %v2064_v7, %v2062_v22  ;;  %v1189_v5 = vsub.f32 0.5, %v1188_v37  ;;  %v1122_v12 = vmul.f32 2.0, %v1121_v11 }
 0x890   :  { %v1250_v32 = vsel %vm1248_vm6, %v1249_v23, %v2065_v13 }
 0x891   :  { %v1251_v33 = vadd.s32 %v1250_v32, %v1246_v27 }
 0x893   :  { %v1252_v35 = vadd.s32 536870912, %v1251_v33 }
 0x895   :  { %v1253_v36 = vshrl.u32 %v1252_v35, 30 }
 0x897   :  { %v1254_v38 = vshll.u32 %v1253_v36, 30  ;;  %v1277_v56 = vsub.s32 4, %v1253_v36 }
 0x899   :  { %v1255_v39 = vsub.s32 %v1251_v33, %v1254_v38  ;;  %v1278_v60 = vsel %vm1193_vm8, %v1277_v56, %v1253_v36 }
 0x89a   :  { %v1280_v61 = vsel %vm1192_vm9, 0, %v1278_v60 }
 0x89b   :  { %v1257_v40 = vsub.s32 0, %v1255_v39  ;;  %v1284_v62 = vadd.s32 3, %v1280_v61 }
 0x89d   :  { %v1364_v41 = vmin.u32 %v1257_v40, %v1255_v39  ;;  %v1285_v63 = vand.u32 3, %v1284_v62 }
 0x89f   :  { %v1259_v42 = vclz %v1364_v41  ;;  %vm1290_vm10 = vcmp.eq.s32.totalorder %v1285_v63, 2  ;;  %vm1287_vm11 = vcmp.eq.s32.totalorder %v1285_v63, 0  ;;  %vm1286_vm12 = vcmp.lt.s32.totalorder %v1285_v63, 2 }
 0x8a1   :  { %v1365_v24 = vadd.s32 4294967294, %v1259_v42 }
 0x8a3   :  { %vm1366_vm7 = vcmp.lt.s32.totalorder %v1365_v24, 0 }
 0x8a4   :  { %v1262_v43 = vsel %vm1366_vm7, 0, %v1365_v24 }
 0x8a5   :  { %v1263_v45 = vsub.s32 32, %v1262_v43  ;;  %v1267_v29 = vsub.s32 4294967266, %v1262_v43  ;;  %v1264_v46 = vshll.u32 %v1255_v39, %v1262_v43 }
 0x8a7   :  { %v1265_v47 = vshrl.u32 %v1247_v44, %v1263_v45  ;;  %v1268_v48 = vadd.s32 127, %v1267_v29 }
 0x8a9   :  { %v1266_v49 = vor.u32 %v1265_v47, %v1264_v46  ;;  %v1269_v50 = vshll.u32 %v1268_v48, 23 }
 0x8ab   :  { %v1270_v51 = vor.u32 4788187, %v1269_v50  ;;  %v1273_v53 = vcvt.s32.f32 %v1266_v49 }
 0x8ad   :  { %v1271_v52 = vand.u32 2147483647, %v1270_v51 }
 0x8af   :  { %v1274_v54 = vmul.f32 %v1273_v53, %v1271_v52 }
 0x8b1   :  { %v1275_v55 = vxor.u32 2147483648, %v1274_v54 }
 0x8b3   :  { %v1276_v57 = vsel %vm1193_vm8, %v1275_v55, %v1274_v54 }
 0x8b4   :  { %v1279_v58 = vsel %vm1192_vm9, %v2055_v31, %v1276_v57  ;;  %v201_v31 = vsub.f32 0.0, %v198_v30 }
 0x8b5   :  { %1592 = vcosq.f32 %v1279_v58 }
 0x8b6   :  { %1594 = vsinq.f32 %v1279_v58  ;;  %v202_v7 = vmul.f32 1.442695, %v201_v31 }
 0x8b7   :  { %1596 = vrcp.f32 %v2052_v0 }
 0x8c2   :  { %v1593_v2 = vpop.eup %1592 }
 0x8c3   :  { %v1595_v3 = vpop.eup %1594  ;;  %v1291_v8 = vxor.u32 2147483648, %v1593_v2 }
 0x8c4   :  { %v1288_v9 = vxor.u32 2147483648, %v1595_v3  ;;  %v1597_v26 = vpop.eup %1596 }
 0x8c5   :  { %v1292_v10 = vsel %vm1290_vm10, %v1291_v8, %v1595_v3 }
 0x8c6   :  { %v1289_v0 = vsel %vm1287_vm11, %v1593_v2, %v1288_v9 }
 0x8c7   :  { %v1293_v16 = vsel %vm1286_vm12, %v1289_v0, %v1292_v10 }
 0x8c8   :  { %v1294_v19 = vsel %vm1283_vm13, nan, %v1293_v16 }
 0x8c9   :  { %v1296_v6 = vmul.f32 %v1597_v26, %v1294_v19 }
 0x8cb   :  { %v1297_v20 = vsel %vm2045_vm15, %v1189_v5, %v1296_v6  ;;  %vm1319_vm15 = vcmask 146432  }
 0x8cc   :  { %v1298_v21 = vmul.f32 %v1297_v20, %v1122_v12 }
 0x8ce   :  { %1598 = vrcp.f32 %v1298_v21 }
 0x8cf   :  { %1600 = vpow2.f32 %v202_v7 }
 0x8db   :  { %v1599_v15 = vpop.eup %1598 }
 0x8dc   :  { %v1301_v22 = vmul.f32 %v1599_v15, %v2019_v28  ;;  %v1300_v59 = vmul.f32 %v1599_v15, %v2015_v25  ;;  %v1302_v17 = vmul.f32 %v1599_v15, %v2029_v34  ;;  %v1601_v28 = vpop.eup %1600 }
 0x8dd   :  { %v204_v13 = vadd.f32 1.0, %v1601_v28 }
 0x8de   :  { %1308 = vrot.lane.b32.xlu1 %v1301_v22, %s1632_s15  ;;  %1304 = vrot.lane.b32.xlu0 %v1300_v59, %s1633_s16 }
 0x8df   :  { %1602 = vrcp.f32 %v204_v13 }
 0x8e2   :  { %1312 = vrot.lane.b32.xlu0 %v1302_v17, %s1634_s17 }
 0x8ec   :  { %v1603_v25 = vpop.eup %1602 }
 0x8ed   :  { %v207_v14 = vmul.f32 1.7578125, %v1603_v25 }
 0x8ef   :  { %v1316_v23 = vsel %vm1315_vm1, %v198_v30, %v207_v14 }
 0x950   :  { %v1305_v34 = vpop.permute.xlu0 %1304  ;;  %v1309_v27 = vpop.permute.xlu1 %1308 }
 0x951   :  { %v1318_v32 = vsel %vm1317_vm14, %v1316_v23, %v1305_v34 }
 0x952   :  { %v1320_v33 = vsel %vm1319_vm15, %v1318_v32, %v1309_v27 }
 0x954   :  { %v1313_v35 = vpop.permute.xlu0 %1312 }
 0x955   :  { %v1322_v4 = vsel %vm1321_vm0, %v1320_v33, %v1313_v35 }
 0x956   :  { %v1324_v36 = vsel %vm1323_vm2, %v1322_v4, 0.0 }
 0x957   :  { %1325 = vst [vmem:[%s2106_s10] sm:$0x3] %v1324_v36 }

</bundles_post_ra>
